<compile_context>
chip_gen: v6e
topology: v6e:2x2x1
jax: 0.10.0
libtpu: 0.0.40
codegen_flags: <defaults>
</compile_context>

<pallas_src>
import functools

import jax
import jax.numpy as jnp
from jax.experimental import pallas as pl
from jax.experimental.pallas import tpu as pltpu


def _make_mlp_kernel(num_layers, compute_dtype):
    """Fused-MLP kernel body for a fixed number of Linear layers.

    Ref order: (x_ref, w0_ref, b0_ref, w1_ref, b1_ref, ..., o_ref).
    Per layer: h <- h @ W_t + b, with `compute_dtype` MXU operands and
    f32 accumulation (preferred_element_type).  Intermediates stay in VMEM.
    """

    def kernel(*refs):
        x_ref = refs[0]
        o_ref = refs[1 + 2 * num_layers]
        h = x_ref[...]
        for l in range(num_layers):
            w_ref = refs[1 + 2 * l]
            b_ref = refs[2 + 2 * l]
            # Cast the activation to the MXU operand dtype *inside* the kernel
            # (avoids a separate XLA cast op + HBM round-trip in the wrapper).
            h = (
                jnp.dot(
                    h.astype(compute_dtype),
                    w_ref[...],
                    preferred_element_type=jnp.float32,
                )
                + b_ref[...]  # f32 bias, broadcasts over the row tile
            )
        o_ref[...] = h.astype(o_ref.dtype)

    return kernel


@functools.partial(jax.jit, static_argnames=("tm",))
def pallas_mlp(x, params, *, tm=512):
    """Fused MLP forward in ONE pallas_call.

    x:      [M, K0]  (any float dtype; cast to the weight dtype in-kernel)
    params: list of (w_t, b) with w_t: [in_features, out_features] (bf16/f32),
            b: [1, out_features] float32.
    Returns float32 [M, n_out].
    """
    M, K0 = x.shape
    num_layers = len(params)
    assert num_layers >= 1
    n_out = params[-1][0].shape[1]
    compute_dtype = params[0][0].dtype

    # Ragged final row tile is handled by Pallas (masked writes, independent
    # rows) -- no padding / slicing round-trips through HBM.
    m_tiles = pl.cdiv(M, tm)

    flat_args = []
    in_specs = [pl.BlockSpec((tm, K0), lambda i: (i, 0))]  # x row tile
    total_kn = 0
    param_bytes = 0
    for w_t, b in params:
        K, N = w_t.shape
        flat_args.append(w_t)
        flat_args.append(b)
        # Full weight / bias blocks, same block index for every row tile
        # (stay VMEM-resident across the whole grid).
        in_specs.append(pl.BlockSpec((K, N), lambda i: (0, 0)))
        in_specs.append(pl.BlockSpec((1, N), lambda i: (0, 0)))
        total_kn += K * N
        param_bytes += K * N * w_t.dtype.itemsize + N * b.dtype.itemsize

    cost = pl.CostEstimate(
        flops=2 * M * total_kn,
        transcendentals=0,
        bytes_accessed=M * K0 * x.dtype.itemsize + param_bytes + M * n_out * 4,
    )

    return pl.pallas_call(
        _make_mlp_kernel(num_layers, compute_dtype),
        out_shape=jax.ShapeDtypeStruct((M, n_out), jnp.float32),
        grid_spec=pl.GridSpec(
            grid=(m_tiles,),
            in_specs=in_specs,
            out_specs=pl.BlockSpec((tm, n_out), lambda i: (i, 0)),
        ),
        compiler_params=pltpu.CompilerParams(
            dimension_semantics=("parallel",),  # shard row tiles across v7x's 2 TCs
        ),
        cost_estimate=cost,
    )(x, *flat_args)


def init_mlp_params(key, widths):
    """nn.Linear-style init: per-layer (W [out,in], b [out]) in float32 —
    faithful to the torch module's parameterization."""
    params = []
    for i in range(len(widths) - 1):
        fan_in, fan_out = widths[i], widths[i + 1]
        key, kw, kb = jax.random.split(key, 3)
        bound = 1.0 / jnp.sqrt(fan_in)
        w = jax.random.uniform(kw, (fan_out, fan_in), jnp.float32, -bound, bound)
        b = jax.random.uniform(kb, (fan_out,), jnp.float32, -bound, bound)
        params.append((w, b))
    return params


def prepare_params(params, *, compute_dtype=jnp.bfloat16, fuse_affine=True):
    """One-time, offline parameter prep for the kernel.

    * Transposes each nn.Linear weight to [in, out] (no per-forward transpose).
    * Optionally pre-composes the activation-free Linear stack into a single
      affine map (valid because this Mlp has NO nonlinearities); composition is
      done in f32 before the bf16 cast.
    * Casts weights to `compute_dtype` MXU operands; biases stay f32 [1, N].
    """
    wt = [(w.T.astype(jnp.float32), b.astype(jnp.float32)) for w, b in params]
    if fuse_affine and len(wt) > 1:
        W, b = wt[0]
        for W_next, b_next in wt[1:]:
            W = W @ W_next
            b = b @ W_next + b_next
        wt = [(W, b)]
    return [
        (W.astype(compute_dtype), b.reshape(1, -1).astype(jnp.float32))
        for W, b in wt
    ]


def mlp_forward(x, prepared_params):
    """Sequential Linear layers (no activations), fused into one Pallas kernel."""
    return pallas_mlp(x, prepared_params)


if __name__ == "__main__":
    # Shapes consistent with the module: x = torch.randn(950, 384); two Linear
    # layers widths = [384, 256, 128].  M = 950 exercises the ragged-tile path.
    widths = [384, 256, 128]
    M = 950

    key = jax.random.PRNGKey(0)
    key, kx = jax.random.split(key)
    x = jax.random.normal(kx, (M, widths[0]), dtype=jnp.float32)
    params = init_mlp_params(key, widths)

    kernel_params = prepare_params(params, compute_dtype=jnp.bfloat16, fuse_affine=True)
    out = mlp_forward(x, kernel_params)
    out = jax.block_until_ready(out)

    # Reference: the original layer-by-layer nn.Linear math in full float32.
    ref = x
    for w, b in params:
        ref = ref @ w.T + b

    assert out.shape == (M, widths[-1])
    assert out.dtype == jnp.float32
    max_err = float(jnp.max(jnp.abs(out - ref)))
    # bf16 operands + pre-composed affine map change rounding slightly; f32
    # accumulation keeps the error well inside this tolerance (~1e-3 typical).
    assert jnp.allclose(out, ref, atol=3e-2, rtol=3e-2), (
        f"mismatch vs reference, max abs err = {max_err}"
    )

    print("KERNEL_OK")
</pallas_src>

<mosaic_0001>
module attributes {stable_mosaic.version = 11 : i64} {
  func.func @kernel(%arg0: i32, %arg1: memref<512x384xf32, #tpu.memory_space<vmem>>, %arg2: memref<384x128xbf16, #tpu.memory_space<vmem>>, %arg3: memref<1x128xf32, #tpu.memory_space<vmem>>, %arg4: memref<512x128xf32, #tpu.memory_space<vmem>>) attributes {dimension_semantics = [#tpu.dimension_semantics<parallel>], iteration_bounds = array<i64: 2>, scalar_prefetch = 0 : i64, scratch_operands = 0 : i64, tpu.core_type = #tpu.core_type<tc>, window_params = [{transform_indices = @transform_0, window_bounds = array<i64: 512, 384>}, {pipeline_mode = #tpu.pipeline_mode<synchronous>, transform_indices = @transform_1, window_bounds = array<i64: 384, 128>}, {pipeline_mode = #tpu.pipeline_mode<synchronous>, transform_indices = @transform_2, window_bounds = array<i64: 1, 128>}, {transform_indices = @transform_3, window_bounds = array<i64: 512, 128>}]} {
    %c0 = arith.constant 0 : index
    %c0_0 = arith.constant 0 : index
    %0 = vector.load %arg1[%c0, %c0_0] : memref<512x384xf32, #tpu.memory_space<vmem>>, vector<512x384xf32>
    %1 = arith.truncf %0 : vector<512x384xf32> to vector<512x384xbf16>
    %c0_1 = arith.constant 0 : index
    %c0_2 = arith.constant 0 : index
    %2 = vector.load %arg2[%c0_1, %c0_2] : memref<384x128xbf16, #tpu.memory_space<vmem>>, vector<384x128xbf16>
    %cst = arith.constant dense<0.000000e+00> : vector<512x128xf32>
    %3 = tpu.matmul %1, %2, %cst {dimension_numbers = #tpu.dot_dimension_numbers<[1], [0], [0], [1], [0, 0, 1, 1], [], []>} : vector<512x384xbf16>, vector<384x128xbf16>, vector<512x128xf32> -> vector<512x128xf32>
    %c0_3 = arith.constant 0 : index
    %c0_4 = arith.constant 0 : index
    %4 = vector.load %arg3[%c0_3, %c0_4] : memref<1x128xf32, #tpu.memory_space<vmem>>, vector<1x128xf32>
    %5 = vector.broadcast %4 : vector<1x128xf32> to vector<512x128xf32>
    %6 = arith.addf %3, %5 : vector<512x128xf32>
    %c0_5 = arith.constant 0 : index
    %c0_6 = arith.constant 0 : index
    %7 = vector.load %arg4[%c0_5, %c0_6] : memref<512x128xf32, #tpu.memory_space<vmem>>, vector<512x128xf32>
    tpu.vector_store %arg4[%c0_5, %c0_6], %6 {strides = array<i32>} : memref<512x128xf32, #tpu.memory_space<vmem>>, vector<512x128xf32>,
    return
  }
  func.func @transform_0(%arg0: i32) -> (i32, i32) {
    %c0_i32 = arith.constant 0 : i32
    %c0_i32_0 = arith.constant 0 : i32
    return %arg0, %c0_i32 : i32, i32
  }
  func.func @transform_1(%arg0: i32) -> (i32, i32) {
    %c0_i32 = arith.constant 0 : i32
    %c0_i32_0 = arith.constant 0 : i32
    %c0_i32_1 = arith.constant 0 : i32
    return %c0_i32, %c0_i32_0 : i32, i32
  }
  func.func @transform_2(%arg0: i32) -> (i32, i32) {
    %c0_i32 = arith.constant 0 : i32
    %c0_i32_0 = arith.constant 0 : i32
    %c0_i32_1 = arith.constant 0 : i32
    return %c0_i32, %c0_i32_0 : i32, i32
  }
  func.func @transform_3(%arg0: i32) -> (i32, i32) {
    %c0_i32 = arith.constant 0 : i32
    %c0_i32_0 = arith.constant 0 : i32
    return %arg0, %c0_i32 : i32, i32
  }
}

</mosaic_0001>

<bundles_post_ra>
// kernel: pallas_mlp.1
= control target key start
LH: loop header
LB: loop body
LE: loop exit
PB: predicated region body
PF: predicated region fallthrough
CT: control target
= control target key end

     0   :  { %8 = vsyncpa [#allocation3], 0  ;;  %s2636_s0 = inlined_call_operand.hbm [shape: f32[950,384], index: 0, kind: input, shape index: {}]   ;;  %s2637_s1 = inlined_call_operand.hbm [shape: bf16[384,128], index: 1, kind: input, shape index: {}]   ;;  %s2638_s2 = inlined_call_operand.hbm [shape: f32[1,128], index: 2, kind: input, shape index: {}]   ;;  %s2639_s3 = inlined_call_operand.hbm [shape: f32[950,128], index: 3, kind: output, shape index: {}]  }
   0x1   :  { %10 = vsyncpa [#allocation3 + $0x1], 0 }
   0x2   :  { %11 = vsyncpa [#allocation6], 0 }
   0x3   :  { %12 = vsyncpa [#allocation4], 0 }
   0x4   :  { %14 = vsyncpa [#allocation4 + $0x1], 0  ;;  %s1953_s12 = smov 0   ;;  %s1955_s13 = smov 0  }
   0x5   :  { %s1957_s14 = smov 0   ;;  %s1959_s15 = smov 0  }
   0x6 LB: > { %s1974_s16 = sadd.s32 4294967295, %s1920_s15   ;;  %s1477_s17 = sadd.s32 4294967294, %s1920_s15   ;;  %s1920_s15 = sphi %s1959_s15, %s2656_s15   ;;  %s1916_s14 = sphi %s1957_s14, %s2655_s14   ;;  %s1912_s13 = sphi %s1955_s13, %s2654_s13   ;;  %s1908_s12 = sphi %s1953_s12, %s2653_s12  }
   0x7   : > { %s1978_s18 = sadd.s32 1, %s1920_s15   ;;  %s27_s19 = sadd.s32 1, %s1916_s14 }
   0x8   : > { %s24_s20 = ssub.s32 %s1920_s15, %s1978_s18  ;;  %p34_p0 = scmp.ne.s32.totalorder %s1916_s14, %s1912_s13 }
   0x9   : > { %p25_p1 = scmp.eq.s32.totalorder %s24_s20, 0  ;;  %p35_p2 = scmp.eq.s32.totalorder %s1920_s15, 0 }
   0xa   : > { %p40_p3 = scmp.ne.s32.totalorder %s1912_s13, %s1908_s12  ;;  %p2640_p4 = scmp.eq.s32.totalorder %s1974_s16, 0 }
   0xb   : > { %s1990_s21 = scalar_select %p25_p1, %s1916_s14, %s27_s19  }
   0xc   : > { %p1992_p5 = por %p35_p2, %p34_p0  ;;  %p1998_p6 = por %p2640_p4, %p40_p3 }
   0xd   : > { %p106_p7 = scmp.eq.s32.totalorder %s1974_s16, 1  ;;  %p112_p8 = scmp.eq.s32.totalorder %s1477_s17, 1 }
   0xe   : > { %p1478_p9 = scmp.ge.s32.totalorder %s1920_s15, 1  ;;  %p119_p10 = scmp.lt.s32.totalorder %s1920_s15, 3 }
   0xf   : > { %p2005_p11 = por %p106_p7, %p34_p0  ;;  %p2009_p12 = por %p112_p8, %p40_p3 }
  0x10   : > { %p2013_p13 = pnand %p1478_p9, %p119_p10  ;;  %s1922_s27 = smov [#allocation5]  }
  0x11   : > { %s2644_s24 = scalar_select %p2005_p11, 1, 0 }
  0x12   : > { %s2645_s25 = scalar_select %p2009_p12, 1, 0 }
  0x13   : > { %p1693_p1 = pneg %p2013_p13  ;;  %s131_s28 = sshll.u32 %s1922_s27, 4  ;;  %s132_s28 = int_to_ptr.vmem [resolvable:$true] %s131_s28 }
  0x14   : > { %s1923_s30 = smov [#allocation7]   ;;  %s1785_s5 = scalar_lea.vmem %s132_s28, 3072 }
  0x15   : > { %p2021_p2 = pnand %p1693_p1, %p2640_p4  ;;  %s145_s4 = sshll.u32 %s1923_s30, 4  ;;  %s146_s4 = int_to_ptr.vmem [resolvable:$true] %s145_s4 }
  0x16   : > { %p1786_p3 = scmp.ne.s32.totalorder %s132_s28, %s1785_s5  ;;  %p1793_p9 = scmp.lt.s32.totalorder %s132_s28, %s132_s28 }
  0x17   : > { %p1776_p0 = pneg %p2021_p2  ;;  %p1794_p10 = scmp.lt.s32.totalorder %s1785_s5, %s1785_s5 }
  0x19   : > { %p1788_p7 = pnand %p1786_p3, %p1776_p0  ;;  %p1795_p12 = por %p1794_p10, %p1793_p9 }
  0x1b   : > { %p1789_p8 = pneg %p1788_p7 }
  0x1d   : > { %p1796_p1 = pnand %p1795_p12, %p1789_p8 }
  0x1f   : > { %1799 = shalt.err (!%p1796_p1)
}
  0x20   : > { %s1924_s6 = smov 64   ;;  %s1925_s7 = smov 4  }
  0x21   : > { %1696 = dma.hbm_to_vmem [thread:$0]  (!%p2021_p2), %s2637_s1, 3072, %s132_s28, [#allocation6], %s1924_s6, %s1924_s6, %s1925_s7  }
  0x22   : > { %s1811_s10 = scalar_lea.vmem %s146_s4, 16  ;;  %s1818_s11 = scalar_lea.vmem %s146_s4, 32 }
  0x23   : > { %p1812_p4 = scmp.ne.s32.totalorder %s146_s4, %s1811_s10  ;;  %p1819_p11 = scmp.lt.s32.totalorder %s146_s4, %s146_s4 }
  0x24   : > { %p1820_p9 = scmp.lt.s32.totalorder %s1818_s11, %s1811_s10 }
  0x25   : > { %p1814_p3 = pnand %p1812_p4, %p1776_p0 }
  0x26   : > { %p1821_p12 = por %p1820_p9, %p1819_p11 }
  0x27   : > { %p1815_p7 = pneg %p1814_p3 }
  0x29   : > { %p1822_p8 = pnand %p1821_p12, %p1815_p7 }
  0x2b   : > { %1825 = shalt.err (!%p1822_p8)
}
  0x2c   : > { %1699 = dma.hbm_to_vmem [thread:$0]  (!%p2021_p2), %s2638_s2, 16, %s146_s4, [#allocation6]  }
  0x2d   : > { %p2641_p10 = scmp.ge.s32.totalorder %s1920_s15, 2 }
  0x2f   : > { %152 = sbr.rel (%p2641_p10) target bundleno = 86 (0x56), region = 24 }
  0x34   : > { %155 = sbr.rel (!%p1992_p5) target bundleno = 86 (0x56), region = 28  ;;  %s156_s20 = sand.u32 (%p1992_p5), 1, %s1916_s14  }
  0x35   : > { %s1482_s27 = sshll.u32 (%p1992_p5), %s1920_s15, 6  ;;  %s1680_s28 = smul.u32 (%p1992_p5), 1536, %s156_s20 }
  0x36   : > { %s162_s30 = ssub.s32 (%p1992_p5), 119, %s1482_s27  ;;  %s2053_s5 = scalar_lea.sflag (%p1992_p5), [#allocation3], %s156_s20 }
  0x37   : > { %p163_p4 = scmp.lt.s32.totalorder (%p1992_p5), %s162_s30, 64  ;;  %s160_s6 = scalar_lea.vmem (%p1992_p5), [#allocation2], %s1680_s28 }
  0x39   : > { %s2658_s30 = smov (!%p163_p4, %s162_s30), 64 }
  0x3a   : > { %s2050_s29 = smul.u32 384, %s2658_s30 }
  0x3c   : > { %s168_s4 = ssub.s32 24576, %s2050_s29 }
  0x3d   : > { %169 = vsyncadd %s2053_s5, %s168_s4  ;;  %p1485_p5 = scmp.ne.s32.totalorder %s2050_s29, 0  ;;  %s1681_s22 = smul.u32 24576, %s1920_s15 }
  0x3e   : > { %s175_s7 = sshll.u32 %s160_s6, 4  ;;  %s1830_s20 = scalar_lea.hbm %s2636_s0, 45696  ;;  %s2063_s7 = int_to_ptr.vmem [resolvable:$true] %s175_s7 }
  0x3f   : > { %s2061_s10 = scalar_lea.hbm %s2636_s0, %s1681_s22 }
  0x40   : > { %s1826_s11 = scalar_lea.hbm %s2061_s10, %s2050_s29  ;;  %p1831_p1 = scmp.lt.s32.totalorder %s2061_s10, %s2636_s0 }
  0x41   : > { %p1827_p11 = scmp.ne.s32.totalorder %s2061_s10, %s1826_s11  ;;  %p1832_p3 = scmp.lt.s32.totalorder %s1830_s20, %s1826_s11 }
  0x43   : > { %p1828_p2 = pnand %p1827_p11, %p1485_p5  ;;  %p1833_p7 = por %p1832_p3, %p1831_p1 }
  0x45   : > { %p1829_p0 = pneg %p1828_p2 }
  0x47   : > { %p1834_p9 = pnand %p1833_p7, %p1829_p0 }
  0x49   : > { %1837 = shalt.err (!%p1834_p9)
}
  0x4a   : > { %s1838_s30 = scalar_lea.vmem %s2063_s7, %s2050_s29  ;;  %s1926_s4 = smov [#allocation2]  }
  0x4b   : > { %p1839_p12 = scmp.ne.s32.totalorder %s2063_s7, %s1838_s30  ;;  %s1842_s6 = sshll.u32 %s1926_s4, 4  ;;  %s1843_s6 = int_to_ptr.vmem [resolvable:$false] %s1842_s6 }
  0x4c   : > { %s1844_s22 = scalar_lea.vmem %s1843_s6, 49152  ;;  %p1845_p11 = scmp.lt.s32.totalorder %s2063_s7, %s1843_s6 }
  0x4d   : > { %p1840_p8 = pnand %p1839_p12, %p1485_p5  ;;  %p1846_p2 = scmp.lt.s32.totalorder %s1844_s22, %s1838_s30 }
  0x4f   : > { %p1841_p4 = pneg %p1840_p8  ;;  %p1847_p10 = por %p1846_p2, %p1845_p11 }
  0x51   : > { %p1848_p1 = pnand %p1847_p10, %p1841_p4 }
  0x53   : > { %1851 = shalt.err (!%p1848_p1)
}
  0x54   : > { %s1927_s8 = smov 384   ;;  %s1928_s9 = smov 24  }
  0x55   : > { %181 = dma.hbm_to_vmem [thread:$0]  (%p1485_p5), %s2061_s10, %s2050_s29, %s2063_s7, %s2053_s5, %s1927_s8, %s1927_s8, %s1928_s9  }
  0x56 PF: > { %187 = sbr.rel (%p2013_p13) target bundleno = 573 (0x23d), region = 32  ;;  %s2092_s11 = sand.u32 (!%p2013_p13), 1, %s1912_s13  }
  0x57   : > { %s1682_s17 = smul.u32 (!%p2013_p13), 1536, %s2092_s11  ;;  %s190_s19 = scalar_lea.sflag (!%p2013_p13), [#allocation3], %s2092_s11 }
  0x59   : > { %s2096_s20 = scalar_lea.vmem (!%p2013_p13), [#allocation2], %s1682_s17 }
  0x5b   : > { %1895 = dma.done.wait (%p1998_p6), %s190_s19, 24576  }
  0x5c   : > { %1897 = vsyncadd (%p1998_p6), %s190_s19, 4294942720  ;;  %p2648_p10 = scmp.eq.s32.totalorder %s1974_s16, 0 }
  0x5e   : > { %1899 = dma.done.wait (%p2648_p10), [#allocation6], 3088   ;;  %p2649_p13 = pmov %p2648_p10 }
  0x5f   : > { %v1929_v0 = vmov 0   ;;  %v1750_v1 = vld [vmem:[#allocation5 + $0x38] sm:$0xff]   ;;  %v1751_v2 = vld [vmem:[#allocation5 + $0x30] sm:$0xff]   ;;  %v1752_v3 = vld [vmem:[#allocation5 + $0x28] sm:$0xff]   ;;  %s1492_s23 = sshll.u32 %s2092_s11, 9  ;;  %s1366_s29 = scalar_lea.sflag [#allocation4], %s2092_s11 }
  0x60   : > { %1901 = vsyncadd (%p2649_p13), [#allocation6], 4294964208  ;;  %723 = vmatprep.subr.bf16.mxu0 %v1929_v0  ;;  %1648 = vmatprep.subr.bf16.mxu1 %v1929_v0  ;;  %v1753_v4 = vld [vmem:[#allocation5 + $0x20] sm:$0xff]   ;;  %v1754_v5 = vld [vmem:[#allocation5 + $0x18] sm:$0xff]   ;;  %s2397_s26 = scalar_lea.vmem [#allocation8], %s1492_s23  ;;  %p2650_p6 = scmp.ne.s32.totalorder %s2644_s24, 0 }
  0x61   : > { %724 = vmatpush1.bf16.msra.mxu0 %v1750_v1  ;;  %1664 = vmatpush1.bf16.msra.mxu1 %v1750_v1  ;;  %v237_v6 = vld [vmem:[%s2096_s20 + $0x8] sm:$0xff]  ;;  %v240_v7 = vld [vmem:[%s2096_s20 + $0x20] sm:$0xff]  ;;  %v1755_v11 = vld [vmem:[#allocation5 + $0x10] sm:$0xff]   ;;  %s1519_s5 = sshll.u32 (%p2650_p6), %s1974_s16, 6 }
  0x62   : > { %725 = vmatprep.subr.bf16.mxu0 %v1929_v0  ;;  %1649 = vmatprep.subr.bf16.mxu1 %v1929_v0  ;;  %v381_v8 = vld [vmem:[%s2096_s20 + $0x488] sm:$0xff]  ;;  %v429_v9 = vpack.c.bf16 %v240_v7, %v237_v6  ;;  %v384_v10 = vld [vmem:[%s2096_s20 + $0x4a0] sm:$0xff]  ;;  %v1758_v15 = vld [vmem:[#allocation5 + $0x78] sm:$0xff]   ;;  %s1374_s7 = ssub.s32 (%p2650_p6), 119, %s1519_s5 }
  0x63   : > { %v501_v12 = vpack.c.bf16 %v384_v10, %v381_v8  ;;  %v1756_v13 = vld [vmem:[#allocation5 + $0x8] sm:$0xff]   ;;  %v1757_v14 = vld [vmem:[#allocation5] sm:$0xff]   ;;  %v1759_v16 = vld [vmem:[#allocation5 + $0x70] sm:$0xff]   ;;  %p1375_p5 = scmp.lt.s32.totalorder (%p2650_p6), %s1374_s7, 64 }
  0x64   : > { %755 = vmatprep.mubr.bf16.mxu0 %v429_v9  ;;  %v1760_v17 = vld [vmem:[#allocation5 + $0x68] sm:$0xff]   ;;  %v1761_v18 = vld [vmem:[#allocation5 + $0x60] sm:$0xff]   ;;  %v1762_v19 = vld [vmem:[#allocation5 + $0x58] sm:$0xff]  }
  0x65   : > { %726 = vmatpush1.bf16.msra.mxu0 %v1751_v2  ;;  %1665 = vmatpush1.bf16.msra.mxu1 %v1751_v2  ;;  %v1763_v20 = vld [vmem:[#allocation5 + $0x50] sm:$0xff]   ;;  %v1764_v21 = vld [vmem:[#allocation5 + $0x48] sm:$0xff]   ;;  %v1765_v22 = vld [vmem:[#allocation5 + $0x40] sm:$0xff]  }
  0x66   : > { %727 = vmatprep.subr.bf16.mxu0 %v1929_v0  ;;  %1650 = vmatprep.subr.bf16.mxu1 %v1929_v0  ;;  %v236_v23 = vld [vmem:[%s2096_s20] sm:$0xff]  ;;  %v239_v24 = vld [vmem:[%s2096_s20 + $0x18] sm:$0xff]  ;;  %v246_v29 = vld [vmem:[%s2096_s20 + $0x50] sm:$0xff] }
  0x67   : > { %947 = vmatprep.mubr.bf16.mxu1 %v501_v12  ;;  %v380_v25 = vld [vmem:[%s2096_s20 + $0x480] sm:$0xff]  ;;  %v383_v26 = vld [vmem:[%s2096_s20 + $0x498] sm:$0xff]  ;;  %v390_v31 = vld [vmem:[%s2096_s20 + $0x4d0] sm:$0xff]  ;;  %v428_v32 = vpack.c.bf16 %v239_v24, %v236_v23 }
  0x68   : > { %v1766_v27 = vld [vmem:[#allocation5 + $0xb8] sm:$0xff]   ;;  %v500_v33 = vpack.c.bf16 %v383_v26, %v380_v25  ;;  %v1767_v36 = vld [vmem:[#allocation5 + $0xb0] sm:$0xff]   ;;  %v245_v38 = vld [vmem:[%s2096_s20 + $0x48] sm:$0xff] }
  0x69   : > { %728 = vmatpush1.bf16.msra.mxu0 %v1752_v3  ;;  %1666 = vmatpush1.bf16.msra.mxu1 %v1752_v3  ;;  %v243_v28 = vld [vmem:[%s2096_s20 + $0x38] sm:$0xff]  ;;  %v242_v37 = vld [vmem:[%s2096_s20 + $0x30] sm:$0xff]  ;;  %v389_v40 = vld [vmem:[%s2096_s20 + $0x4c8] sm:$0xff] }
  0x6a   : > { %729 = vmatprep.subr.bf16.mxu0 %v1929_v0  ;;  %1651 = vmatprep.subr.bf16.mxu1 %v1929_v0  ;;  %v387_v30 = vld [vmem:[%s2096_s20 + $0x4b8] sm:$0xff]  ;;  %v432_v34 = vpack.c.bf16 %v246_v29, %v243_v28  ;;  %v386_v39 = vld [vmem:[%s2096_s20 + $0x4b0] sm:$0xff]  ;;  %v249_v41 = vld [vmem:[%s2096_s20 + $0x68] sm:$0xff]  ;;  %v431_v46 = vpack.c.bf16 %v245_v38, %v242_v37 }
  0x6b   : > { %v504_v35 = vpack.c.bf16 %v390_v31, %v387_v30  ;;  %v252_v42 = vld [vmem:[%s2096_s20 + $0x80] sm:$0xff]  ;;  %v393_v43 = vld [vmem:[%s2096_s20 + $0x4e8] sm:$0xff]  ;;  %v503_v47 = vpack.c.bf16 %v389_v40, %v386_v39  ;;  %v251_v52 = vld [vmem:[%s2096_s20 + $0x78] sm:$0xff] }
  0x6c   : > { %v396_v44 = vld [vmem:[%s2096_s20 + $0x500] sm:$0xff]  ;;  %v1768_v45 = vld [vmem:[#allocation5 + $0xa8] sm:$0xff]   ;;  %v435_v48 = vpack.c.bf16 %v252_v42, %v249_v41  ;;  %v395_v54 = vld [vmem:[%s2096_s20 + $0x4f8] sm:$0xff] }
  0x6d   : > { %730 = vmatpush1.bf16.msra.mxu0 %v1753_v4  ;;  %1667 = vmatpush1.bf16.msra.mxu1 %v1753_v4  ;;  %v507_v49 = vpack.c.bf16 %v396_v44, %v393_v43  ;;  %v1769_v50 = vld [vmem:[#allocation5 + $0xa0] sm:$0xff]   ;;  %v255_v55 = vld [vmem:[%s2096_s20 + $0x98] sm:$0xff]  ;;  %v258_v56 = vld [vmem:[%s2096_s20 + $0xb0] sm:$0xff] }
  0x6e   : > { %731 = vmatprep.subr.bf16.mxu0 %v1929_v0  ;;  %1652 = vmatprep.subr.bf16.mxu1 %v1929_v0  ;;  %v248_v51 = vld [vmem:[%s2096_s20 + $0x60] sm:$0xff]  ;;  %v399_v57 = vld [vmem:[%s2096_s20 + $0x518] sm:$0xff]  ;;  %v402_v58 = vld [vmem:[%s2096_s20 + $0x530] sm:$0xff]  ;;  %v438_v62 = vpack.c.bf16 %v258_v56, %v255_v55 }
  0x6f   : > { %v392_v53 = vld [vmem:[%s2096_s20 + $0x4e0] sm:$0xff]  ;;  %v1770_v59 = vld [vmem:[#allocation5 + $0x98] sm:$0xff]   ;;  %v434_v60 = vpack.c.bf16 %v251_v52, %v248_v51  ;;  %v510_v63 = vpack.c.bf16 %v402_v58, %v399_v57  ;;  %v254_v1 = vld [vmem:[%s2096_s20 + $0x90] sm:$0xff] }
  0x70   : > { %v506_v61 = vpack.c.bf16 %v395_v54, %v392_v53  ;;  %v257_v2 = vld [vmem:[%s2096_s20 + $0xa8] sm:$0xff]  ;;  %v398_v3 = vld [vmem:[%s2096_s20 + $0x510] sm:$0xff]  ;;  %v264_v6 = vld [vmem:[%s2096_s20 + $0xe0] sm:$0xff] }
  0x71   : > { %732 = vmatpush1.bf16.msra.mxu0 %v1754_v5  ;;  %1668 = vmatpush1.bf16.msra.mxu1 %v1754_v5  ;;  %v401_v4 = vld [vmem:[%s2096_s20 + $0x528] sm:$0xff]  ;;  %v408_v8 = vld [vmem:[%s2096_s20 + $0x560] sm:$0xff]  ;;  %v437_v10 = vpack.c.bf16 %v257_v2, %v254_v1  ;;  %v410_v29 = vld [vmem:[%s2096_s20 + $0x570] sm:$0xff] }
  0x72   : > { %733 = vmatprep.subr.bf16.mxu0 %v1929_v0  ;;  %1653 = vmatprep.subr.bf16.mxu1 %v1929_v0  ;;  %v261_v5 = vld [vmem:[%s2096_s20 + $0xc8] sm:$0xff]  ;;  %v272_v39 = vld [vmem:[%s2096_s20 + $0x120] sm:$0xff]  ;;  %v275_v40 = vld [vmem:[%s2096_s20 + $0x138] sm:$0xff] }
  0x73   : > { %v405_v7 = vld [vmem:[%s2096_s20 + $0x548] sm:$0xff]  ;;  %v441_v12 = vpack.c.bf16 %v264_v6, %v261_v5  ;;  %v416_v41 = vld [vmem:[%s2096_s20 + $0x5a0] sm:$0xff]  ;;  %v419_v42 = vld [vmem:[%s2096_s20 + $0x5b8] sm:$0xff] }
  0x74   : > { %v1772_v9 = vld [vmem:[#allocation5 + $0x88] sm:$0xff]   ;;  %v279_v43 = vld [vmem:[%s2096_s20 + $0x158] sm:$0xff]  ;;  %v282_v44 = vld [vmem:[%s2096_s20 + $0x170] sm:$0xff] }
  0x75   : > { %734 = vmatpush1.bf16.msra.mxu0 %v1755_v11  ;;  %1669 = vmatpush1.bf16.msra.mxu1 %v1755_v11  ;;  %v509_v11 = vpack.c.bf16 %v401_v4, %v398_v3  ;;  %v269_v28 = vld [vmem:[%s2096_s20 + $0x108] sm:$0xff]  ;;  %v278_v51 = vld [vmem:[%s2096_s20 + $0x150] sm:$0xff]  ;;  %v288_v56 = vld [vmem:[%s2096_s20 + $0x1a0] sm:$0xff] }
  0x76   : > { %735 = vmatprep.subr.bf16.mxu0 %v1929_v0  ;;  %1654 = vmatprep.subr.bf16.mxu1 %v1929_v0  ;;  %v413_v30 = vld [vmem:[%s2096_s20 + $0x588] sm:$0xff]  ;;  %v422_v53 = vld [vmem:[%s2096_s20 + $0x5d0] sm:$0xff]  ;;  %v244_v1 = vld [vmem:[%s2096_s20 + $0x40] sm:$0xff] }
  0x77   : > { %v273_v31 = vld [vmem:[%s2096_s20 + $0x128] sm:$0xff]  ;;  %v238_v57 = vld [vmem:[%s2096_s20 + $0x10] sm:$0xff]  ;;  %v247_v2 = vld [vmem:[%s2096_s20 + $0x58] sm:$0xff] }
  0x78   : > { %v281_v52 = vld [vmem:[%s2096_s20 + $0x168] sm:$0xff]  ;;  %v291_v3 = vld [vmem:[%s2096_s20 + $0x1b8] sm:$0xff]  ;;  %v294_v4 = vld [vmem:[%s2096_s20 + $0x1d0] sm:$0xff] }
  0x79   : > { %736 = vmatpush1.bf16.msra.mxu0 %v1756_v13  ;;  %1670 = vmatpush1.bf16.msra.mxu1 %v1756_v13  ;;  %v513_v13 = vpack.c.bf16 %v408_v8, %v405_v7  ;;  %v425_v54 = vld [vmem:[%s2096_s20 + $0x5e8] sm:$0xff]  ;;  %v250_v5 = vld [vmem:[%s2096_s20 + $0x70] sm:$0xff]  ;;  %v433_v8 = vpack.c.bf16 %v247_v2, %v244_v1 }
  0x7a   : > { %737 = vmatprep.subr.bf16.mxu0 %v1929_v0  ;;  %1655 = vmatprep.subr.bf16.mxu1 %v1929_v0  ;;  %v285_v55 = vld [vmem:[%s2096_s20 + $0x188] sm:$0xff]  ;;  %v310_v1 = vld [vmem:[%s2096_s20 + $0x250] sm:$0xff] }
  0x7b   : > { %v241_v58 = vld [vmem:[%s2096_s20 + $0x28] sm:$0xff] }
  0x7c   : > { %v253_v6 = vld [vmem:[%s2096_s20 + $0x88] sm:$0xff] }
  0x7d   : > { %738 = vmatpush1.bf16.msra.mxu0 %v1757_v14  ;;  %1671 = vmatpush1.bf16.msra.mxu1 %v1757_v14  ;;  %v1773_v14 = vld [vmem:[#allocation5 + $0x80] sm:$0xff]   ;;  %v313_v2 = vld [vmem:[%s2096_s20 + $0x268] sm:$0xff] }
  0x7e   : > { %739 = vmatprep.subr.bf16.mxu0 %v1929_v0  ;;  %1656 = vmatprep.subr.bf16.mxu1 %v1929_v0 }
  0x81   : > { %740 = vmatpush2.bf16.msra.mxu0 %v1758_v15  ;;  %1672 = vmatpush2.bf16.msra.mxu1 %v1758_v15  ;;  %v260_v15 = vld [vmem:[%s2096_s20 + $0xc0] sm:$0xff] }
  0x82   : > { %741 = vmatprep.subr.bf16.mxu0 %v1929_v0  ;;  %1657 = vmatprep.subr.bf16.mxu1 %v1929_v0 }
  0x85   : > { %742 = vmatpush2.bf16.msra.mxu0 %v1759_v16  ;;  %1673 = vmatpush2.bf16.msra.mxu1 %v1759_v16  ;;  %v263_v16 = vld [vmem:[%s2096_s20 + $0xd8] sm:$0xff] }
  0x86   : > { %743 = vmatprep.subr.bf16.mxu0 %v1929_v0  ;;  %1658 = vmatprep.subr.bf16.mxu1 %v1929_v0  ;;  %v440_v23 = vpack.c.bf16 %v263_v16, %v260_v15  ;;  %v297_v15 = vld [vmem:[%s2096_s20 + $0x1e8] sm:$0xff]  ;;  %v300_v16 = vld [vmem:[%s2096_s20 + $0x200] sm:$0xff] }
  0x89   : > { %744 = vmatpush2.bf16.msra.mxu0 %v1760_v17  ;;  %1674 = vmatpush2.bf16.msra.mxu1 %v1760_v17  ;;  %v404_v17 = vld [vmem:[%s2096_s20 + $0x540] sm:$0xff] }
  0x8a   : > { %745 = vmatprep.subr.bf16.mxu0 %v1929_v0  ;;  %1659 = vmatprep.subr.bf16.mxu1 %v1929_v0 }
  0x8d   : > { %746 = vmatpush2.bf16.msra.mxu0 %v1761_v18  ;;  %1675 = vmatpush2.bf16.msra.mxu1 %v1761_v18  ;;  %v407_v18 = vld [vmem:[%s2096_s20 + $0x558] sm:$0xff] }
  0x8e   : > { %747 = vmatprep.subr.bf16.mxu0 %v1929_v0  ;;  %1660 = vmatprep.subr.bf16.mxu1 %v1929_v0  ;;  %v512_v24 = vpack.c.bf16 %v407_v18, %v404_v17  ;;  %v262_v17 = vld [vmem:[%s2096_s20 + $0xd0] sm:$0xff]  ;;  %v265_v18 = vld [vmem:[%s2096_s20 + $0xe8] sm:$0xff] }
  0x91   : > { %748 = vmatpush2.bf16.msra.mxu0 %v1762_v19  ;;  %1676 = vmatpush2.bf16.msra.mxu1 %v1762_v19  ;;  %v267_v19 = vld [vmem:[%s2096_s20 + $0xf8] sm:$0xff] }
  0x92   : > { %749 = vmatprep.subr.bf16.mxu0 %v1929_v0  ;;  %1661 = vmatprep.subr.bf16.mxu1 %v1929_v0 }
  0x95   : > { %750 = vmatpush2.bf16.msra.mxu0 %v1763_v20  ;;  %1677 = vmatpush2.bf16.msra.mxu1 %v1763_v20  ;;  %v270_v20 = vld [vmem:[%s2096_s20 + $0x110] sm:$0xff] }
  0x96   : > { %751 = vmatprep.subr.bf16.mxu0 %v1929_v0  ;;  %1662 = vmatprep.subr.bf16.mxu1 %v1929_v0  ;;  %v444_v25 = vpack.c.bf16 %v270_v20, %v267_v19 }
  0x99   : > { %752 = vmatpush2.bf16.msra.mxu0 %v1764_v21  ;;  %1678 = vmatpush2.bf16.msra.mxu1 %v1764_v21  ;;  %v411_v21 = vld [vmem:[%s2096_s20 + $0x578] sm:$0xff] }
  0x9a   : > { %753 = vmatprep.subr.bf16.mxu0 %v1929_v0  ;;  %1663 = vmatprep.subr.bf16.mxu1 %v1929_v0  ;;  %v1771_v0 = vld [vmem:[#allocation5 + $0x90] sm:$0xff]  }
  0x9d   : > { %754 = vmatpush2.bf16.msra.mxu0 %v1765_v22  ;;  %1679 = vmatpush2.bf16.msra.mxu1 %v1765_v22  ;;  %v414_v22 = vld [vmem:[%s2096_s20 + $0x590] sm:$0xff] }
  0x9e   : > { %1568 = vmatprep.subr.bf16.mxu1 %v1766_v27  ;;  %v516_v26 = vpack.c.bf16 %v414_v22, %v411_v21  ;;  %v459_v21 = vpack.c.bf16 %v300_v16, %v297_v15  ;;  %v442_v22 = vpack.c.bf16 %v265_v18, %v262_v17 }
  0xa0   : > { %756 = vmatmul.mubr.bf16.vlgmr.msra.gmra.mxu0 %v428_v32  ;;  %948 = vmatmul.mubr.bf16.vlgmr.msra.gmra.mxu1 %v500_v33  ;;  %v276_v32 = vld [vmem:[%s2096_s20 + $0x140] sm:$0xff]  ;;  %v417_v33 = vld [vmem:[%s2096_s20 + $0x5a8] sm:$0xff] }
  0xa1   : > { %1569 = vmatpush3.bf16.msra.mxu1 %v1766_v27  ;;  %763 = vmatprep.mubr.bf16.mxu0 %v432_v34  ;;  %v266_v27 = vld [vmem:[%s2096_s20 + $0xf0] sm:$0xff]  ;;  %v420_v34 = vld [vmem:[%s2096_s20 + $0x5c0] sm:$0xff]  ;;  %v447_v37 = vpack.c.bf16 %v276_v32, %v273_v31 }
  0xa2   : > { %955 = vmatprep.mubr.bf16.mxu1 %v504_v35  ;;  %1570 = vmatprep.subr.bf16.mxu1 %v1767_v36  ;;  %v443_v35 = vpack.c.bf16 %v269_v28, %v266_v27  ;;  %v519_v38 = vpack.c.bf16 %v420_v34, %v417_v33  ;;  %v303_v27 = vld [vmem:[%s2096_s20 + $0x218] sm:$0xff]  ;;  %v306_v28 = vld [vmem:[%s2096_s20 + $0x230] sm:$0xff] }
  0xa3   : > { %v462_v33 = vpack.c.bf16 %v306_v28, %v303_v27 }
  0xa5   : > { %1571 = vmatpush3.bf16.msra.mxu1 %v1767_v36  ;;  %v515_v36 = vpack.c.bf16 %v413_v30, %v410_v29  ;;  %v274_v29 = vld [vmem:[%s2096_s20 + $0x130] sm:$0xff]  ;;  %v277_v30 = vld [vmem:[%s2096_s20 + $0x148] sm:$0xff] }
  0xa6   : > { %1572 = vmatprep.subr.bf16.mxu1 %v1768_v45  ;;  %v448_v34 = vpack.c.bf16 %v277_v30, %v274_v29 }
  0xa8   : > { %764 = vmatmul.mubr.bf16.gmra.mxu0 %v431_v46  ;;  %956 = vmatmul.mubr.bf16.gmra.mxu1 %v503_v47  ;;  %v426_v46 = vld [vmem:[%s2096_s20 + $0x5f0] sm:$0xff]  ;;  %v446_v47 = vpack.c.bf16 %v275_v40, %v272_v39  ;;  %v309_v39 = vld [vmem:[%s2096_s20 + $0x248] sm:$0xff]  ;;  %v312_v40 = vld [vmem:[%s2096_s20 + $0x260] sm:$0xff] }
  0xa9   : > { %771 = vmatprep.mubr.bf16.mxu0 %v435_v48  ;;  %963 = vmatprep.mubr.bf16.mxu1 %v507_v49  ;;  %v518_v48 = vpack.c.bf16 %v419_v42, %v416_v41  ;;  %v450_v49 = vpack.c.bf16 %v282_v44, %v279_v43  ;;  %v286_v41 = vld [vmem:[%s2096_s20 + $0x190] sm:$0xff]  ;;  %v289_v42 = vld [vmem:[%s2096_s20 + $0x1a8] sm:$0xff] }
  0xaa   : > { %1573 = vmatpush3.bf16.msra.mxu1 %v1768_v45  ;;  %v423_v45 = vld [vmem:[%s2096_s20 + $0x5d8] sm:$0xff] }
  0xab   : > { %1574 = vmatprep.subr.bf16.mxu1 %v1769_v50 }
  0xae   : > { %1575 = vmatpush3.bf16.msra.mxu1 %v1769_v50  ;;  %v522_v50 = vpack.c.bf16 %v426_v46, %v423_v45  ;;  %v465_v45 = vpack.c.bf16 %v312_v40, %v309_v39  ;;  %v454_v46 = vpack.c.bf16 %v289_v42, %v286_v41 }
  0xaf   : > { %1576 = vmatprep.subr.bf16.mxu1 %v1770_v59 }
  0xb0   : > { %772 = vmatmul.mubr.bf16.gmra.mxu0 %v434_v60  ;;  %964 = vmatmul.mubr.bf16.gmra.mxu1 %v506_v61  ;;  %v521_v60 = vpack.c.bf16 %v425_v54, %v422_v53  ;;  %v453_v61 = vpack.c.bf16 %v288_v56, %v285_v55  ;;  %v298_v53 = vld [vmem:[%s2096_s20 + $0x1f0] sm:$0xff]  ;;  %v301_v54 = vld [vmem:[%s2096_s20 + $0x208] sm:$0xff] }
  0xb1   : > { %779 = vmatprep.mubr.bf16.mxu0 %v438_v62  ;;  %971 = vmatprep.mubr.bf16.mxu1 %v510_v63  ;;  %v430_v62 = vpack.c.bf16 %v241_v58, %v238_v57  ;;  %v284_v63 = vld [vmem:[%s2096_s20 + $0x180] sm:$0xff]  ;;  %v460_v58 = vpack.c.bf16 %v301_v54, %v298_v53 }
  0xb2   : > { %1577 = vmatpush3.bf16.msra.mxu1 %v1770_v59  ;;  %v449_v59 = vpack.c.bf16 %v281_v52, %v278_v51  ;;  %v315_v51 = vld [vmem:[%s2096_s20 + $0x278] sm:$0xff]  ;;  %v318_v52 = vld [vmem:[%s2096_s20 + $0x290] sm:$0xff] }
  0xb3   : > { %1578 = vmatprep.subr.bf16.mxu1 %v1771_v0  ;;  %v468_v57 = vpack.c.bf16 %v318_v52, %v315_v51 }
  0xb6   : > { %1579 = vmatpush3.bf16.msra.mxu1 %v1771_v0  ;;  %v287_v0 = vld [vmem:[%s2096_s20 + $0x198] sm:$0xff] }
  0xb7   : > { %1580 = vmatprep.subr.bf16.mxu1 %v1772_v9  ;;  %v452_v7 = vpack.c.bf16 %v287_v0, %v284_v63  ;;  %v321_v63 = vld [vmem:[%s2096_s20 + $0x2a8] sm:$0xff]  ;;  %v324_v0 = vld [vmem:[%s2096_s20 + $0x2c0] sm:$0xff] }
  0xb8   : > { %780 = vmatmul.mubr.bf16.gmra.mxu0 %v437_v10  ;;  %972 = vmatmul.mubr.bf16.gmra.mxu1 %v509_v11  ;;  %v436_v10 = vpack.c.bf16 %v253_v6, %v250_v5  ;;  %v290_v11 = vld [vmem:[%s2096_s20 + $0x1b0] sm:$0xff]  ;;  %v471_v5 = vpack.c.bf16 %v324_v0, %v321_v63  ;;  %v466_v6 = vpack.c.bf16 %v313_v2, %v310_v1 }
  0xb9   : > { %787 = vmatprep.mubr.bf16.mxu0 %v441_v12  ;;  %979 = vmatprep.mubr.bf16.mxu1 %v513_v13  ;;  %v293_v12 = vld [vmem:[%s2096_s20 + $0x1c8] sm:$0xff]  ;;  %v256_v13 = vld [vmem:[%s2096_s20 + $0xa0] sm:$0xff] }
  0xba   : > { %1581 = vmatpush3.bf16.msra.mxu1 %v1772_v9  ;;  %v456_v9 = vpack.c.bf16 %v294_v4, %v291_v3  ;;  %v455_v19 = vpack.c.bf16 %v293_v12, %v290_v11  ;;  %v327_v11 = vld [vmem:[%s2096_s20 + $0x2d8] sm:$0xff]  ;;  %v330_v12 = vld [vmem:[%s2096_s20 + $0x2f0] sm:$0xff] }
  0xbb   : > { %1582 = vmatprep.subr.bf16.mxu1 %v1773_v14  ;;  %v474_v17 = vpack.c.bf16 %v330_v12, %v327_v11 }
  0xbe   : > { %1583 = vmatpush3.bf16.msra.mxu1 %v1773_v14  ;;  %v259_v14 = vld [vmem:[%s2096_s20 + $0xb8] sm:$0xff] }
  0xbf   : > { %v439_v20 = vpack.c.bf16 %v259_v14, %v256_v13  ;;  %v322_v13 = vld [vmem:[%s2096_s20 + $0x2b0] sm:$0xff]  ;;  %v325_v14 = vld [vmem:[%s2096_s20 + $0x2c8] sm:$0xff] }
  0xc0   : > { %788 = vmatmul.mubr.bf16.gmra.mxu0 %v440_v23  ;;  %980 = vmatmul.mubr.bf16.gmra.mxu1 %v512_v24  ;;  %v296_v23 = vld [vmem:[%s2096_s20 + $0x1e0] sm:$0xff]  ;;  %v299_v24 = vld [vmem:[%s2096_s20 + $0x1f8] sm:$0xff]  ;;  %v472_v18 = vpack.c.bf16 %v325_v14, %v322_v13 }
  0xc1   : > { %795 = vmatprep.mubr.bf16.mxu0 %v444_v25  ;;  %987 = vmatprep.mubr.bf16.mxu1 %v516_v26  ;;  %v268_v25 = vld [vmem:[%s2096_s20 + $0x100] sm:$0xff]  ;;  %v271_v26 = vld [vmem:[%s2096_s20 + $0x118] sm:$0xff]  ;;  %v458_v31 = vpack.c.bf16 %v299_v24, %v296_v23  ;;  %v333_v23 = vld [vmem:[%s2096_s20 + $0x308] sm:$0xff] }
  0xc2   : > { %v445_v32 = vpack.c.bf16 %v271_v26, %v268_v25  ;;  %v336_v24 = vld [vmem:[%s2096_s20 + $0x320] sm:$0xff]  ;;  %v334_v25 = vld [vmem:[%s2096_s20 + $0x310] sm:$0xff]  ;;  %v337_v26 = vld [vmem:[%s2096_s20 + $0x328] sm:$0xff] }
  0xc3   : > { %v477_v29 = vpack.c.bf16 %v336_v24, %v333_v23  ;;  %v478_v30 = vpack.c.bf16 %v337_v26, %v334_v25 }
  0xc8   : > { %796 = vmatmul.mubr.bf16.gmra.mxu0 %v443_v35  ;;  %988 = vmatmul.mubr.bf16.gmra.mxu1 %v515_v36  ;;  %v302_v35 = vld [vmem:[%s2096_s20 + $0x210] sm:$0xff]  ;;  %v305_v36 = vld [vmem:[%s2096_s20 + $0x228] sm:$0xff] }
  0xc9   : > { %803 = vmatprep.mubr.bf16.mxu0 %v447_v37  ;;  %995 = vmatprep.mubr.bf16.mxu1 %v519_v38  ;;  %v280_v37 = vld [vmem:[%s2096_s20 + $0x160] sm:$0xff]  ;;  %v283_v38 = vld [vmem:[%s2096_s20 + $0x178] sm:$0xff]  ;;  %v461_v43 = vpack.c.bf16 %v305_v36, %v302_v35  ;;  %v342_v36 = vld [vmem:[%s2096_s20 + $0x350] sm:$0xff] }
  0xca   : > { %v451_v44 = vpack.c.bf16 %v283_v38, %v280_v37  ;;  %v339_v35 = vld [vmem:[%s2096_s20 + $0x338] sm:$0xff]  ;;  %v346_v37 = vld [vmem:[%s2096_s20 + $0x370] sm:$0xff]  ;;  %v349_v38 = vld [vmem:[%s2096_s20 + $0x388] sm:$0xff] }
  0xcb   : > { %v480_v41 = vpack.c.bf16 %v342_v36, %v339_v35  ;;  %v484_v42 = vpack.c.bf16 %v349_v38, %v346_v37 }
  0xd0   : > { %804 = vmatmul.mubr.bf16.gmra.mxu0 %v446_v47  ;;  %996 = vmatmul.mubr.bf16.gmra.mxu1 %v518_v48  ;;  %v308_v47 = vld [vmem:[%s2096_s20 + $0x240] sm:$0xff]  ;;  %v311_v48 = vld [vmem:[%s2096_s20 + $0x258] sm:$0xff] }
  0xd1   : > { %811 = vmatprep.mubr.bf16.mxu0 %v450_v49  ;;  %1003 = vmatprep.mubr.bf16.mxu1 %v522_v50  ;;  %v292_v49 = vld [vmem:[%s2096_s20 + $0x1c0] sm:$0xff]  ;;  %v295_v50 = vld [vmem:[%s2096_s20 + $0x1d8] sm:$0xff]  ;;  %v464_v55 = vpack.c.bf16 %v311_v48, %v308_v47  ;;  %v345_v47 = vld [vmem:[%s2096_s20 + $0x368] sm:$0xff] }
  0xd2   : > { %v457_v56 = vpack.c.bf16 %v295_v50, %v292_v49  ;;  %v348_v48 = vld [vmem:[%s2096_s20 + $0x380] sm:$0xff]  ;;  %v358_v49 = vld [vmem:[%s2096_s20 + $0x3d0] sm:$0xff]  ;;  %v361_v50 = vld [vmem:[%s2096_s20 + $0x3e8] sm:$0xff] }
  0xd3   : > { %v483_v53 = vpack.c.bf16 %v348_v48, %v345_v47  ;;  %v490_v54 = vpack.c.bf16 %v361_v50, %v358_v49 }
  0xd8   : > { %812 = vmatmul.mubr.bf16.gmra.mxu0 %v449_v59  ;;  %1004 = vmatmul.mubr.bf16.gmra.mxu1 %v521_v60  ;;  %v314_v59 = vld [vmem:[%s2096_s20 + $0x270] sm:$0xff]  ;;  %v317_v60 = vld [vmem:[%s2096_s20 + $0x288] sm:$0xff] }
  0xd9   : > { %819 = vmatprep.mubr.bf16.mxu0 %v453_v61  ;;  %1584 = vmatprep.mubr.bf16.mxu1 %v430_v62  ;;  %v304_v61 = vld [vmem:[%s2096_s20 + $0x220] sm:$0xff]  ;;  %v307_v62 = vld [vmem:[%s2096_s20 + $0x238] sm:$0xff]  ;;  %v467_v3 = vpack.c.bf16 %v317_v60, %v314_v59  ;;  %v354_v60 = vld [vmem:[%s2096_s20 + $0x3b0] sm:$0xff] }
  0xda   : > { %v463_v4 = vpack.c.bf16 %v307_v62, %v304_v61  ;;  %v351_v59 = vld [vmem:[%s2096_s20 + $0x398] sm:$0xff]  ;;  %v370_v61 = vld [vmem:[%s2096_s20 + $0x430] sm:$0xff]  ;;  %v373_v62 = vld [vmem:[%s2096_s20 + $0x448] sm:$0xff] }
  0xdb   : > { %v486_v1 = vpack.c.bf16 %v354_v60, %v351_v59  ;;  %v496_v2 = vpack.c.bf16 %v373_v62, %v370_v61 }
  0xe0   : > { %820 = vmatmul.mubr.bf16.gmra.mxu0 %v452_v7  ;;  %1585 = vmatmul.mubr.bf16.vlgmr.msra.gmra.mxu1 %v433_v8  ;;  %v320_v7 = vld [vmem:[%s2096_s20 + $0x2a0] sm:$0xff]  ;;  %v323_v8 = vld [vmem:[%s2096_s20 + $0x2b8] sm:$0xff] }
  0xe1   : > { %827 = vmatprep.mubr.bf16.mxu0 %v456_v9  ;;  %1588 = vmatprep.mubr.bf16.mxu1 %v436_v10  ;;  %v316_v9 = vld [vmem:[%s2096_s20 + $0x280] sm:$0xff]  ;;  %v319_v10 = vld [vmem:[%s2096_s20 + $0x298] sm:$0xff]  ;;  %v470_v15 = vpack.c.bf16 %v323_v8, %v320_v7  ;;  %v357_v7 = vld [vmem:[%s2096_s20 + $0x3c8] sm:$0xff] }
  0xe2   : > { %v469_v16 = vpack.c.bf16 %v319_v10, %v316_v9  ;;  %v360_v8 = vld [vmem:[%s2096_s20 + $0x3e0] sm:$0xff]  ;;  %v382_v9 = vld [vmem:[%s2096_s20 + $0x490] sm:$0xff]  ;;  %v385_v10 = vld [vmem:[%s2096_s20 + $0x4a8] sm:$0xff] }
  0xe3   : > { %v489_v13 = vpack.c.bf16 %v360_v8, %v357_v7  ;;  %v502_v14 = vpack.c.bf16 %v385_v10, %v382_v9 }
  0xe8   : > { %828 = vmatmul.mubr.bf16.gmra.mxu0 %v455_v19  ;;  %1589 = vmatmul.mubr.bf16.gmra.mxu1 %v439_v20  ;;  %v326_v19 = vld [vmem:[%s2096_s20 + $0x2d0] sm:$0xff]  ;;  %v329_v20 = vld [vmem:[%s2096_s20 + $0x2e8] sm:$0xff] }
  0xe9   : > { %835 = vmatprep.mubr.bf16.mxu0 %v459_v21  ;;  %1592 = vmatprep.mubr.bf16.mxu1 %v442_v22  ;;  %v328_v21 = vld [vmem:[%s2096_s20 + $0x2e0] sm:$0xff]  ;;  %v331_v22 = vld [vmem:[%s2096_s20 + $0x2f8] sm:$0xff]  ;;  %v473_v27 = vpack.c.bf16 %v329_v20, %v326_v19  ;;  %v366_v20 = vld [vmem:[%s2096_s20 + $0x410] sm:$0xff] }
  0xea   : > { %v475_v28 = vpack.c.bf16 %v331_v22, %v328_v21  ;;  %v363_v19 = vld [vmem:[%s2096_s20 + $0x3f8] sm:$0xff]  ;;  %v394_v21 = vld [vmem:[%s2096_s20 + $0x4f0] sm:$0xff]  ;;  %v397_v22 = vld [vmem:[%s2096_s20 + $0x508] sm:$0xff] }
  0xeb   : > { %v492_v25 = vpack.c.bf16 %v366_v20, %v363_v19  ;;  %v508_v26 = vpack.c.bf16 %v397_v22, %v394_v21 }
  0xf0   : > { %836 = vmatmul.mubr.bf16.gmra.mxu0 %v458_v31  ;;  %1593 = vmatmul.mubr.bf16.gmra.mxu1 %v445_v32  ;;  %v332_v31 = vld [vmem:[%s2096_s20 + $0x300] sm:$0xff]  ;;  %v335_v32 = vld [vmem:[%s2096_s20 + $0x318] sm:$0xff] }
  0xf1   : > { %843 = vmatprep.mubr.bf16.mxu0 %v462_v33  ;;  %1596 = vmatprep.mubr.bf16.mxu1 %v448_v34  ;;  %v340_v33 = vld [vmem:[%s2096_s20 + $0x340] sm:$0xff]  ;;  %v343_v34 = vld [vmem:[%s2096_s20 + $0x358] sm:$0xff]  ;;  %v476_v39 = vpack.c.bf16 %v335_v32, %v332_v31  ;;  %v369_v31 = vld [vmem:[%s2096_s20 + $0x428] sm:$0xff] }
  0xf2   : > { %v481_v40 = vpack.c.bf16 %v343_v34, %v340_v33  ;;  %v372_v32 = vld [vmem:[%s2096_s20 + $0x440] sm:$0xff]  ;;  %v406_v33 = vld [vmem:[%s2096_s20 + $0x550] sm:$0xff]  ;;  %v409_v34 = vld [vmem:[%s2096_s20 + $0x568] sm:$0xff] }
  0xf3   : > { %v495_v37 = vpack.c.bf16 %v372_v32, %v369_v31  ;;  %v514_v38 = vpack.c.bf16 %v409_v34, %v406_v33 }
  0xf8   : > { %844 = vmatmul.mubr.bf16.gmra.mxu0 %v461_v43  ;;  %1597 = vmatmul.mubr.bf16.gmra.mxu1 %v451_v44  ;;  %v338_v43 = vld [vmem:[%s2096_s20 + $0x330] sm:$0xff]  ;;  %v341_v44 = vld [vmem:[%s2096_s20 + $0x348] sm:$0xff] }
  0xf9   : > { %851 = vmatprep.mubr.bf16.mxu0 %v465_v45  ;;  %1600 = vmatprep.mubr.bf16.mxu1 %v454_v46  ;;  %v352_v45 = vld [vmem:[%s2096_s20 + $0x3a0] sm:$0xff]  ;;  %v355_v46 = vld [vmem:[%s2096_s20 + $0x3b8] sm:$0xff]  ;;  %v479_v51 = vpack.c.bf16 %v341_v44, %v338_v43  ;;  %v378_v44 = vld [vmem:[%s2096_s20 + $0x470] sm:$0xff] }
  0xfa   : > { %v487_v52 = vpack.c.bf16 %v355_v46, %v352_v45  ;;  %v375_v43 = vld [vmem:[%s2096_s20 + $0x458] sm:$0xff]  ;;  %v418_v45 = vld [vmem:[%s2096_s20 + $0x5b0] sm:$0xff]  ;;  %v421_v46 = vld [vmem:[%s2096_s20 + $0x5c8] sm:$0xff] }
  0xfb   : > { %v498_v49 = vpack.c.bf16 %v378_v44, %v375_v43  ;;  %v520_v50 = vpack.c.bf16 %v421_v46, %v418_v45 }
 0x100   : > { %852 = vmatmul.mubr.bf16.gmra.mxu0 %v464_v55  ;;  %1601 = vmatmul.mubr.bf16.gmra.mxu1 %v457_v56  ;;  %v344_v55 = vld [vmem:[%s2096_s20 + $0x360] sm:$0xff]  ;;  %v347_v56 = vld [vmem:[%s2096_s20 + $0x378] sm:$0xff] }
 0x101   : > { %859 = vmatprep.mubr.bf16.mxu0 %v468_v57  ;;  %1604 = vmatprep.mubr.bf16.mxu1 %v460_v58  ;;  %v364_v57 = vld [vmem:[%s2096_s20 + $0x400] sm:$0xff]  ;;  %v367_v58 = vld [vmem:[%s2096_s20 + $0x418] sm:$0xff]  ;;  %v482_v63 = vpack.c.bf16 %v347_v56, %v344_v55 }
 0x102   : > { %v493_v0 = vpack.c.bf16 %v367_v58, %v364_v57 }
 0x108   : > { %860 = vmatmul.mubr.bf16.gmra.mxu0 %v467_v3  ;;  %1605 = vmatmul.mubr.bf16.gmra.mxu1 %v463_v4  ;;  %v350_v3 = vld [vmem:[%s2096_s20 + $0x390] sm:$0xff]  ;;  %v353_v4 = vld [vmem:[%s2096_s20 + $0x3a8] sm:$0xff] }
 0x109   : > { %867 = vmatprep.mubr.bf16.mxu0 %v471_v5  ;;  %1608 = vmatprep.mubr.bf16.mxu1 %v466_v6  ;;  %v376_v5 = vld [vmem:[%s2096_s20 + $0x460] sm:$0xff]  ;;  %v379_v6 = vld [vmem:[%s2096_s20 + $0x478] sm:$0xff]  ;;  %v485_v11 = vpack.c.bf16 %v353_v4, %v350_v3 }
 0x10a   : > { %v499_v12 = vpack.c.bf16 %v379_v6, %v376_v5 }
 0x110   : > { %868 = vmatmul.mubr.bf16.gmra.mxu0 %v470_v15  ;;  %1609 = vmatmul.mubr.bf16.gmra.mxu1 %v469_v16  ;;  %v356_v15 = vld [vmem:[%s2096_s20 + $0x3c0] sm:$0xff]  ;;  %v359_v16 = vld [vmem:[%s2096_s20 + $0x3d8] sm:$0xff] }
 0x111   : > { %875 = vmatprep.mubr.bf16.mxu0 %v474_v17  ;;  %1612 = vmatprep.mubr.bf16.mxu1 %v472_v18  ;;  %v388_v17 = vld [vmem:[%s2096_s20 + $0x4c0] sm:$0xff]  ;;  %v391_v18 = vld [vmem:[%s2096_s20 + $0x4d8] sm:$0xff]  ;;  %v488_v23 = vpack.c.bf16 %v359_v16, %v356_v15 }
 0x112   : > { %v505_v24 = vpack.c.bf16 %v391_v18, %v388_v17 }
 0x118   : > { %876 = vmatmul.mubr.bf16.gmra.mxu0 %v473_v27  ;;  %1613 = vmatmul.mubr.bf16.gmra.mxu1 %v475_v28  ;;  %v362_v27 = vld [vmem:[%s2096_s20 + $0x3f0] sm:$0xff]  ;;  %v365_v28 = vld [vmem:[%s2096_s20 + $0x408] sm:$0xff] }
 0x119   : > { %883 = vmatprep.mubr.bf16.mxu0 %v477_v29  ;;  %1616 = vmatprep.mubr.bf16.mxu1 %v478_v30  ;;  %v400_v29 = vld [vmem:[%s2096_s20 + $0x520] sm:$0xff]  ;;  %v403_v30 = vld [vmem:[%s2096_s20 + $0x538] sm:$0xff]  ;;  %v491_v35 = vpack.c.bf16 %v365_v28, %v362_v27 }
 0x11a   : > { %v511_v36 = vpack.c.bf16 %v403_v30, %v400_v29 }
 0x120   : > { %884 = vmatmul.mubr.bf16.gmra.mxu0 %v476_v39  ;;  %1617 = vmatmul.mubr.bf16.gmra.mxu1 %v481_v40  ;;  %v368_v39 = vld [vmem:[%s2096_s20 + $0x420] sm:$0xff]  ;;  %v371_v40 = vld [vmem:[%s2096_s20 + $0x438] sm:$0xff] }
 0x121   : > { %891 = vmatprep.mubr.bf16.mxu0 %v480_v41  ;;  %1620 = vmatprep.mubr.bf16.mxu1 %v484_v42  ;;  %v412_v41 = vld [vmem:[%s2096_s20 + $0x580] sm:$0xff]  ;;  %v415_v42 = vld [vmem:[%s2096_s20 + $0x598] sm:$0xff]  ;;  %v494_v47 = vpack.c.bf16 %v371_v40, %v368_v39 }
 0x122   : > { %v517_v48 = vpack.c.bf16 %v415_v42, %v412_v41 }
 0x128   : > { %892 = vmatmul.mubr.bf16.gmra.mxu0 %v479_v51  ;;  %1621 = vmatmul.mubr.bf16.gmra.mxu1 %v487_v52  ;;  %v374_v51 = vld [vmem:[%s2096_s20 + $0x450] sm:$0xff]  ;;  %v377_v52 = vld [vmem:[%s2096_s20 + $0x468] sm:$0xff] }
 0x129   : > { %899 = vmatprep.mubr.bf16.mxu0 %v483_v53  ;;  %1624 = vmatprep.mubr.bf16.mxu1 %v490_v54  ;;  %v424_v53 = vld [vmem:[%s2096_s20 + $0x5e0] sm:$0xff]  ;;  %v427_v54 = vld [vmem:[%s2096_s20 + $0x5f8] sm:$0xff]  ;;  %v497_v55 = vpack.c.bf16 %v377_v52, %v374_v51 }
 0x12a   : > { %v523_v56 = vpack.c.bf16 %v427_v54, %v424_v53 }
 0x130   : > { %900 = vmatmul.mubr.bf16.gmra.mxu0 %v482_v63  ;;  %1625 = vmatmul.mubr.bf16.gmra.mxu1 %v493_v0 }
 0x131   : > { %907 = vmatprep.mubr.bf16.mxu0 %v486_v1  ;;  %1628 = vmatprep.mubr.bf16.mxu1 %v496_v2 }
 0x138   : > { %908 = vmatmul.mubr.bf16.gmra.mxu0 %v485_v11  ;;  %1629 = vmatmul.mubr.bf16.gmra.mxu1 %v499_v12 }
 0x139   : > { %915 = vmatprep.mubr.bf16.mxu0 %v489_v13  ;;  %1632 = vmatprep.mubr.bf16.mxu1 %v502_v14 }
 0x140   : > { %916 = vmatmul.mubr.bf16.gmra.mxu0 %v488_v23  ;;  %1633 = vmatmul.mubr.bf16.gmra.mxu1 %v505_v24 }
 0x141   : > { %923 = vmatprep.mubr.bf16.mxu0 %v492_v25  ;;  %1636 = vmatprep.mubr.bf16.mxu1 %v508_v26 }
 0x148   : > { %924 = vmatmul.mubr.bf16.gmra.mxu0 %v491_v35  ;;  %1637 = vmatmul.mubr.bf16.gmra.mxu1 %v511_v36 }
 0x149   : > { %931 = vmatprep.mubr.bf16.mxu0 %v495_v37  ;;  %1640 = vmatprep.mubr.bf16.mxu1 %v514_v38 }
 0x150   : > { %932 = vmatmul.mubr.bf16.gmra.mxu0 %v494_v47  ;;  %1641 = vmatmul.mubr.bf16.gmra.mxu1 %v517_v48 }
 0x151   : > { %939 = vmatprep.mubr.bf16.mxu0 %v498_v49  ;;  %1644 = vmatprep.mubr.bf16.mxu1 %v520_v50 }
 0x158   : > { %940 = vmatmul.mubr.bf16.gmra.mxu0 %v497_v55  ;;  %1645 = vmatmul.mubr.bf16.gmra.mxu1 %v523_v56  ;;  %v2389_v55 = vld [vmem:[#allocation7] ss:$0 sm:$0xff] }
 0x160   : > { %v2330_v57 = vpop.f32.mrf.mxu0  ;;  %v2332_v58 = vpop.f32.mrf.mxu1 }
 0x162   : > { %v759_v59 = vpop.f32.mrf.mxu0  ;;  %v951_v60 = vpop.f32.mrf.mxu1 }
 0x164   : > { %v2334_v61 = vpop.f32.mrf.mxu0  ;;  %v2336_v62 = vpop.f32.mrf.mxu1 }
 0x166   : > { %v762_v63 = vpop.f32.mrf.mxu0  ;;  %v954_v0 = vpop.f32.mrf.mxu1 }
 0x168   : > { %v765_v1 = vpop.f32.mrf.mxu0  ;;  %v2338_v2 = vpop.f32.mrf.mxu1 }
 0x169   : > { %v766_v60 = vadd.f32 %v2389_v55, %v765_v1 }
 0x16a   : > { %v767_v3 = vpop.f32.mrf.mxu0  ;;  %v959_v4 = vpop.f32.mrf.mxu1 }
 0x16b   : > { %v758_v3 = vadd.f32 %v2389_v55, %v2330_v57 }
 0x16c   : > { %v768_v5 = vpop.f32.mrf.mxu0  ;;  %v2340_v6 = vpop.f32.mrf.mxu1 }
 0x16e   : > { %v770_v7 = vpop.f32.mrf.mxu0  ;;  %v962_v8 = vpop.f32.mrf.mxu1 }
 0x170   : > { %v2342_v9 = vpop.f32.mrf.mxu0  ;;  %v2344_v10 = vpop.f32.mrf.mxu1 }
 0x172   : > { %v775_v11 = vpop.f32.mrf.mxu0  ;;  %v967_v12 = vpop.f32.mrf.mxu1 }
 0x173   : > { %v769_v11 = vadd.f32 %v2389_v55, %v768_v5 }
 0x174   : > { %v2346_v13 = vpop.f32.mrf.mxu0  ;;  %v2348_v14 = vpop.f32.mrf.mxu1 }
 0x176   : > { %v778_v15 = vpop.f32.mrf.mxu0  ;;  %v970_v16 = vpop.f32.mrf.mxu1 }
 0x177   : > { %v761_v16 = vadd.f32 %v2389_v55, %v2334_v61 }
 0x178   : > { %v781_v17 = vpop.f32.mrf.mxu0  ;;  %v2350_v18 = vpop.f32.mrf.mxu1 }
 0x179   : > { %v782_v5 = vadd.f32 %v2389_v55, %v781_v17 }
 0x17a   : > { %v783_v19 = vpop.f32.mrf.mxu0  ;;  %v975_v20 = vpop.f32.mrf.mxu1 }
 0x17c   : > { %v2352_v21 = vpop.f32.mrf.mxu0  ;;  %v2354_v22 = vpop.f32.mrf.mxu1 }
 0x17e   : > { %v786_v23 = vpop.f32.mrf.mxu0  ;;  %v978_v24 = vpop.f32.mrf.mxu1 }
 0x180   : > { %v2356_v25 = vpop.f32.mrf.mxu0  ;;  %v2358_v26 = vpop.f32.mrf.mxu1 }
 0x182   : > { %v791_v27 = vpop.f32.mrf.mxu0  ;;  %v983_v28 = vpop.f32.mrf.mxu1 }
 0x183   : > { %v774_v28 = vadd.f32 %v2389_v55, %v2342_v9 }
 0x184   : > { %v2360_v29 = vpop.f32.mrf.mxu0  ;;  %v2362_v30 = vpop.f32.mrf.mxu1 }
 0x186   : > { %v794_v31 = vpop.f32.mrf.mxu0  ;;  %v986_v32 = vpop.f32.mrf.mxu1 }
 0x188   : > { %v2364_v33 = vpop.f32.mrf.mxu0  ;;  %v2366_v34 = vpop.f32.mrf.mxu1 }
 0x18a   : > { %v799_v35 = vpop.f32.mrf.mxu0  ;;  %v991_v36 = vpop.f32.mrf.mxu1 }
 0x18b   : > { %v785_v35 = vadd.f32 %v2389_v55, %v2352_v21 }
 0x18c   : > { %v2368_v37 = vpop.f32.mrf.mxu0  ;;  %v2370_v38 = vpop.f32.mrf.mxu1 }
 0x18e   : > { %v802_v39 = vpop.f32.mrf.mxu0  ;;  %v994_v40 = vpop.f32.mrf.mxu1 }
 0x18f   : > { %v777_v40 = vadd.f32 %v2389_v55, %v2346_v13 }
 0x190   : > { %v2372_v41 = vpop.f32.mrf.mxu0  ;;  %v2374_v42 = vpop.f32.mrf.mxu1 }
 0x192   : > { %v807_v43 = vpop.f32.mrf.mxu0  ;;  %v999_v44 = vpop.f32.mrf.mxu1 }
 0x194   : > { %v2376_v45 = vpop.f32.mrf.mxu0  ;;  %v2378_v46 = vpop.f32.mrf.mxu1 }
 0x196   : > { %v810_v47 = vpop.f32.mrf.mxu0  ;;  %v1002_v48 = vpop.f32.mrf.mxu1 }
 0x197   : > { %v798_v47 = vadd.f32 %v2389_v55, %v2364_v33 }
 0x198   : > { %v2380_v49 = vpop.f32.mrf.mxu0  ;;  %v2382_v50 = vpop.f32.mrf.mxu1 }
 0x19a   : > { %v815_v51 = vpop.f32.mrf.mxu0  ;;  %v1007_v52 = vpop.f32.mrf.mxu1 }
 0x19b   : > { %v790_v52 = vadd.f32 %v2389_v55, %v2356_v25 }
 0x19c   : > { %v2384_v53 = vpop.f32.mrf.mxu0  ;;  %v2386_v54 = vpop.f32.mrf.mxu1 }
 0x19e   : > { %v818_v56 = vpop.f32.mrf.mxu0  ;;  %v1010_v59 = vpop.f32.mrf.mxu1 }
 0x1a0   : > { %v2392_v63 = vpop.f32.mrf.mxu0  ;;  %v1586_v0 = vpop.f32.mrf.mxu1 }
 0x1a1   : > { %v1055_v4 = vadd.f32 %v1586_v0, %v766_v60  ;;  %v801_v60 = vadd.f32 %v2389_v55, %v2368_v37 }
 0x1a2   : > { %v823_v7 = vpop.f32.mrf.mxu0  ;;  %v1046_v8 = vpop.f32.mrf.mxu1 }
 0x1a3   : > { %1303 = vst [vmem:[%s2397_s26 + $0x10] sm:$0xff] %v1055_v4  ;;  %v1047_v12 = vadd.f32 %v1046_v8, %v758_v3  ;;  %v793_v4 = vadd.f32 %v2389_v55, %v2360_v29 }
 0x1a4   : > { %v2400_v1 = vpop.f32.mrf.mxu0  ;;  %v1587_v15 = vpop.f32.mrf.mxu1 }
 0x1a5   : > { %1301 = vst [vmem:[%s2397_s26] sm:$0xff] %v1047_v12  ;;  %v1058_v57 = vadd.f32 %v1587_v15, %v769_v11  ;;  %v814_v11 = vadd.f32 %v2389_v55, %v2380_v49 }
 0x1a6   : > { %v826_v19 = vpop.f32.mrf.mxu0  ;;  %v1049_v20 = vpop.f32.mrf.mxu1 }
 0x1a7   : > { %1304 = vst [vmem:[%s2397_s26 + $0x18] sm:$0xff] %v1058_v57  ;;  %v1050_v23 = vadd.f32 %v1049_v20, %v761_v16  ;;  %v806_v16 = vadd.f32 %v2389_v55, %v2372_v41  ;;  %v817_v20 = vadd.f32 %v2389_v55, %v2384_v53 }
 0x1a8   : > { %v829_v24 = vpop.f32.mrf.mxu0  ;;  %v1590_v27 = vpop.f32.mrf.mxu1 }
 0x1a9   : > { %1302 = vst [vmem:[%s2397_s26 + $0x8] sm:$0xff] %v1050_v23  ;;  %v1071_v31 = vadd.f32 %v1590_v27, %v782_v5  ;;  %v809_v27 = vadd.f32 %v2389_v55, %v2376_v45 }
 0x1aa   : > { %v831_v32 = vpop.f32.mrf.mxu0  ;;  %v1062_v61 = vpop.f32.mrf.mxu1 }
 0x1ab   : > { %1307 = vst [vmem:[%s2397_s26 + $0x30] sm:$0xff] %v1071_v31  ;;  %v1063_v36 = vadd.f32 %v1062_v61, %v774_v28  ;;  %v830_v32 = vadd.f32 %v2389_v55, %v829_v24 }
 0x1ac   : > { %v832_v17 = vpop.f32.mrf.mxu0  ;;  %v1591_v39 = vpop.f32.mrf.mxu1 }
 0x1ad   : > { %1305 = vst [vmem:[%s2397_s26 + $0x20] sm:$0xff] %v1063_v36  ;;  %v1074_v43 = vadd.f32 %v1591_v39, %v785_v35  ;;  %v822_v36 = vadd.f32 %v2389_v55, %v2392_v63 }
 0x1ae   : > { %v834_v9 = vpop.f32.mrf.mxu0  ;;  %v1065_v44 = vpop.f32.mrf.mxu1 }
 0x1af   : > { %1308 = vst [vmem:[%s2397_s26 + $0x38] sm:$0xff] %v1074_v43  ;;  %v1066_v48 = vadd.f32 %v1065_v44, %v777_v40  ;;  %v833_v43 = vadd.f32 %v2389_v55, %v832_v17 }
 0x1b0   : > { %v837_v21 = vpop.f32.mrf.mxu0  ;;  %v1594_v51 = vpop.f32.mrf.mxu1 }
 0x1b1   : > { %1306 = vst [vmem:[%s2397_s26 + $0x28] sm:$0xff] %v1066_v48  ;;  %v1087_v56 = vadd.f32 %v1594_v51, %v798_v47  ;;  %v825_v47 = vadd.f32 %v2389_v55, %v2400_v1 }
 0x1b2   : > { %v839_v13 = vpop.f32.mrf.mxu0  ;;  %v1078_v59 = vpop.f32.mrf.mxu1 }
 0x1b3   : > { %1311 = vst [vmem:[%s2397_s26 + $0x50] sm:$0xff] %v1087_v56  ;;  %v1079_v0 = vadd.f32 %v1078_v59, %v790_v52  ;;  %v838_v59 = vadd.f32 %v2389_v55, %v837_v21 }
 0x1b4   : > { %v840_v33 = vpop.f32.mrf.mxu0  ;;  %v1595_v3 = vpop.f32.mrf.mxu1 }
 0x1b5   : > { %1309 = vst [vmem:[%s2397_s26 + $0x40] sm:$0xff] %v1079_v0  ;;  %v1090_v7 = vadd.f32 %v1595_v3, %v801_v60 }
 0x1b6   : > { %v842_v25 = vpop.f32.mrf.mxu0  ;;  %v1081_v8 = vpop.f32.mrf.mxu1 }
 0x1b7   : > { %1312 = vst [vmem:[%s2397_s26 + $0x58] sm:$0xff] %v1090_v7  ;;  %v1082_v12 = vadd.f32 %v1081_v8, %v793_v4  ;;  %v841_v8 = vadd.f32 %v2389_v55, %v840_v33 }
 0x1b8   : > { %v845_v37 = vpop.f32.mrf.mxu0  ;;  %v1598_v15 = vpop.f32.mrf.mxu1 }
 0x1b9   : > { %1310 = vst [vmem:[%s2397_s26 + $0x48] sm:$0xff] %v1082_v12  ;;  %v1103_v57 = vadd.f32 %v1598_v15, %v814_v11  ;;  %v846_v52 = vadd.f32 %v2389_v55, %v845_v37 }
 0x1ba   : > { %v847_v29 = vpop.f32.mrf.mxu0  ;;  %v1094_v19 = vpop.f32.mrf.mxu1 }
 0x1bb   : > { %1315 = vst [vmem:[%s2397_s26 + $0x70] sm:$0xff] %v1103_v57  ;;  %v1095_v5 = vadd.f32 %v1094_v19, %v806_v16 }
 0x1bc   : > { %v848_v49 = vpop.f32.mrf.mxu0  ;;  %v1599_v23 = vpop.f32.mrf.mxu1 }
 0x1bd   : > { %1313 = vst [vmem:[%s2397_s26 + $0x60] sm:$0xff] %v1095_v5  ;;  %v1106_v28 = vadd.f32 %v1599_v23, %v817_v20  ;;  %v849_v1 = vadd.f32 %v2389_v55, %v848_v49 }
 0x1be   : > { %v850_v41 = vpop.f32.mrf.mxu0  ;;  %v1097_v31 = vpop.f32.mrf.mxu1 }
 0x1bf   : > { %1316 = vst [vmem:[%s2397_s26 + $0x78] sm:$0xff] %v1106_v28  ;;  %v1098_v61 = vadd.f32 %v1097_v31, %v809_v27 }
 0x1c0   : > { %v853_v35 = vpop.f32.mrf.mxu0  ;;  %v1602_v53 = vpop.f32.mrf.mxu1 }
 0x1c1   : > { %1314 = vst [vmem:[%s2397_s26 + $0x68] sm:$0xff] %v1098_v61  ;;  %v1119_v39 = vadd.f32 %v1602_v53, %v830_v32  ;;  %v854_v29 = vadd.f32 %v2389_v55, %v853_v35 }
 0x1c2   : > { %v855_v40 = vpop.f32.mrf.mxu0  ;;  %v1110_v45 = vpop.f32.mrf.mxu1 }
 0x1c3   : > { %1319 = vst [vmem:[%s2397_s26 + $0x90] sm:$0xff] %v1119_v39  ;;  %v1111_v9 = vadd.f32 %v1110_v45, %v822_v36 }
 0x1c4   : > { %v856_v44 = vpop.f32.mrf.mxu0  ;;  %v1603_v24 = vpop.f32.mrf.mxu1 }
 0x1c5   : > { %1317 = vst [vmem:[%s2397_s26 + $0x80] sm:$0xff] %v1111_v9  ;;  %v1122_v48 = vadd.f32 %v1603_v24, %v833_v43  ;;  %v857_v28 = vadd.f32 %v2389_v55, %v856_v44 }
 0x1c6   : > { %v858_v51 = vpop.f32.mrf.mxu0  ;;  %v1113_v63 = vpop.f32.mrf.mxu1 }
 0x1c7   : > { %1320 = vst [vmem:[%s2397_s26 + $0x98] sm:$0xff] %v1122_v48  ;;  %v1114_v56 = vadd.f32 %v1113_v63, %v825_v47 }
 0x1c8   : > { %v861_v13 = vpop.f32.mrf.mxu0  ;;  %v1606_v17 = vpop.f32.mrf.mxu1 }
 0x1c9   : > { %1318 = vst [vmem:[%s2397_s26 + $0x88] sm:$0xff] %v1114_v56  ;;  %v1135_v60 = vadd.f32 %v1606_v17, %v846_v52  ;;  %v862_v21 = vadd.f32 %v2389_v55, %v861_v13 }
 0x1ca   : > { %v863_v0 = vpop.f32.mrf.mxu0  ;;  %v1126_v3 = vpop.f32.mrf.mxu1 }
 0x1cb   : > { %1323 = vst [vmem:[%s2397_s26 + $0xb0] sm:$0xff] %v1135_v60  ;;  %v1127_v4 = vadd.f32 %v1126_v3, %v838_v59 }
 0x1cc   : > { %v864_v7 = vpop.f32.mrf.mxu0  ;;  %v1607_v25 = vpop.f32.mrf.mxu1 }
 0x1cd   : > { %1321 = vst [vmem:[%s2397_s26 + $0xa0] sm:$0xff] %v1127_v4  ;;  %v1138_v11 = vadd.f32 %v1607_v25, %v849_v1  ;;  %v865_v33 = vadd.f32 %v2389_v55, %v864_v7 }
 0x1ce   : > { %v866_v12 = vpop.f32.mrf.mxu0  ;;  %v1129_v37 = vpop.f32.mrf.mxu1 }
 0x1cf   : > { %1324 = vst [vmem:[%s2397_s26 + $0xb8] sm:$0xff] %v1138_v11  ;;  %v1130_v15 = vadd.f32 %v1129_v37, %v841_v8 }
 0x1d0   : > { %v869_v16 = vpop.f32.mrf.mxu0  ;;  %v1610_v57 = vpop.f32.mrf.mxu1 }
 0x1d1   : > { %1322 = vst [vmem:[%s2397_s26 + $0xa8] sm:$0xff] %v1130_v15  ;;  %v1151_v19 = vadd.f32 %v1610_v57, %v862_v21  ;;  %v870_v36 = vadd.f32 %v2389_v55, %v869_v16 }
 0x1d2   : > { %v871_v20 = vpop.f32.mrf.mxu0  ;;  %v1142_v5 = vpop.f32.mrf.mxu1 }
 0x1d3   : > { %1327 = vst [vmem:[%s2397_s26 + $0xd0] sm:$0xff] %v1151_v19  ;;  %v1143_v49 = vadd.f32 %v1142_v5, %v854_v29 }
 0x1d4   : > { %v872_v23 = vpop.f32.mrf.mxu0  ;;  %v1611_v27 = vpop.f32.mrf.mxu1 }
 0x1d5   : > { %1325 = vst [vmem:[%s2397_s26 + $0xc0] sm:$0xff] %v1143_v49  ;;  %v1154_v41 = vadd.f32 %v1611_v27, %v865_v33  ;;  %v873_v47 = vadd.f32 %v2389_v55, %v872_v23 }
 0x1d6   : > { %v874_v31 = vpop.f32.mrf.mxu0  ;;  %v1145_v32 = vpop.f32.mrf.mxu1 }
 0x1d7   : > { %1328 = vst [vmem:[%s2397_s26 + $0xd8] sm:$0xff] %v1154_v41  ;;  %v1146_v61 = vadd.f32 %v1145_v32, %v857_v28 }
 0x1d8   : > { %v877_v35 = vpop.f32.mrf.mxu0  ;;  %v1614_v53 = vpop.f32.mrf.mxu1 }
 0x1d9   : > { %1326 = vst [vmem:[%s2397_s26 + $0xc8] sm:$0xff] %v1146_v61  ;;  %v878_v39 = vadd.f32 %v2389_v55, %v877_v35 }
 0x1da   : > { %v879_v40 = vpop.f32.mrf.mxu0  ;;  %v1158_v45 = vpop.f32.mrf.mxu1 }
 0x1db   : > { %v1167_v43 = vadd.f32 %v1614_v53, %v878_v39  ;;  %v1159_v9 = vadd.f32 %v1158_v45, %v870_v36 }
 0x1dc   : > { %v880_v44 = vpop.f32.mrf.mxu0  ;;  %v1615_v24 = vpop.f32.mrf.mxu1 }
 0x1dd   : > { %1331 = vst [vmem:[%s2397_s26 + $0xf0] sm:$0xff] %v1167_v43  ;;  %1329 = vst [vmem:[%s2397_s26 + $0xe0] sm:$0xff] %v1159_v9  ;;  %v881_v48 = vadd.f32 %v2389_v55, %v880_v44 }
 0x1de   : > { %v882_v51 = vpop.f32.mrf.mxu0  ;;  %v1161_v63 = vpop.f32.mrf.mxu1 }
 0x1df   : > { %v1170_v52 = vadd.f32 %v1615_v24, %v881_v48  ;;  %v1162_v56 = vadd.f32 %v1161_v63, %v873_v47 }
 0x1e0   : > { %v885_v13 = vpop.f32.mrf.mxu0  ;;  %v1618_v17 = vpop.f32.mrf.mxu1 }
 0x1e1   : > { %1332 = vst [vmem:[%s2397_s26 + $0xf8] sm:$0xff] %v1170_v52  ;;  %1330 = vst [vmem:[%s2397_s26 + $0xe8] sm:$0xff] %v1162_v56  ;;  %v886_v59 = vadd.f32 %v2389_v55, %v885_v13  ;;  %v958_v13 = vadd.f32 %v2389_v55, %v2338_v2 }
 0x1e2   : > { %v887_v60 = vpop.f32.mrf.mxu0  ;;  %v1174_v0 = vpop.f32.mrf.mxu1 }
 0x1e3   : > { %v1175_v3 = vadd.f32 %v1174_v0, %v886_v59  ;;  %v950_v0 = vadd.f32 %v2389_v55, %v2332_v58  ;;  %v953_v58 = vadd.f32 %v2389_v55, %v2336_v62  ;;  %v966_v62 = vadd.f32 %v2389_v55, %v2344_v10 }
 0x1e4   : > { %v888_v1 = vpop.f32.mrf.mxu0  ;;  %v1619_v4 = vpop.f32.mrf.mxu1  ;;  %v969_v10 = vadd.f32 %v2389_v55, %v2348_v14  ;;  %v982_v14 = vadd.f32 %v2389_v55, %v2358_v26  ;;  %v985_v26 = vadd.f32 %v2389_v55, %v2362_v30  ;;  %v998_v30 = vadd.f32 %v2389_v55, %v2374_v42 }
 0x1e5   : > { %1333 = vst [vmem:[%s2397_s26 + $0x100] sm:$0xff] %v1175_v3  ;;  %v889_v7 = vadd.f32 %v2389_v55, %v888_v1 }
 0x1e6   : > { %v890_v25 = vpop.f32.mrf.mxu0  ;;  %v1177_v8 = vpop.f32.mrf.mxu1 }
 0x1e7   : > { %v1178_v11 = vadd.f32 %v1177_v8, %v889_v7  ;;  %v961_v25 = vadd.f32 %v2389_v55, %v2340_v6  ;;  %v974_v6 = vadd.f32 %v2389_v55, %v2350_v18  ;;  %v977_v18 = vadd.f32 %v2389_v55, %v2354_v22 }
 0x1e8   : > { %v893_v12 = vpop.f32.mrf.mxu0  ;;  %v1622_v37 = vpop.f32.mrf.mxu1  ;;  %v990_v22 = vadd.f32 %v2389_v55, %v2366_v34  ;;  %v993_v34 = vadd.f32 %v2389_v55, %v2370_v38  ;;  %v1006_v38 = vadd.f32 %v2389_v55, %v2382_v50  ;;  %v1009_v50 = vadd.f32 %v2389_v55, %v2386_v54 }
 0x1e9   : > { %1334 = vst [vmem:[%s2397_s26 + $0x108] sm:$0xff] %v1178_v11  ;;  %v894_v21 = vadd.f32 %v2389_v55, %v893_v12 }
 0x1ea   : > { %v895_v15 = vpop.f32.mrf.mxu0  ;;  %v1190_v16 = vpop.f32.mrf.mxu1 }
 0x1eb   : > { %v1183_v57 = vadd.f32 %v1618_v17, %v894_v21 }
 0x1ec   : > { %v896_v29 = vpop.f32.mrf.mxu0  ;;  %v1623_v19 = vpop.f32.mrf.mxu1 }
 0x1ed   : > { %1335 = vst [vmem:[%s2397_s26 + $0x110] sm:$0xff] %v1183_v57  ;;  %v897_v20 = vadd.f32 %v2389_v55, %v896_v29 }
 0x1ee   : > { %v898_v5 = vpop.f32.mrf.mxu0  ;;  %v1193_v33 = vpop.f32.mrf.mxu1 }
 0x1ef   : > { %v1186_v49 = vadd.f32 %v1619_v4, %v897_v20 }
 0x1f0   : > { %v901_v23 = vpop.f32.mrf.mxu0  ;;  %v2483_v27 = vpop.f32.mrf.mxu1 }
 0x1f1   : > { %1336 = vst [vmem:[%s2397_s26 + $0x118] sm:$0xff] %v1186_v49  ;;  %v902_v28 = vadd.f32 %v2389_v55, %v901_v23 }
 0x1f2   : > { %v903_v41 = vpop.f32.mrf.mxu0  ;;  %v1206_v31 = vpop.f32.mrf.mxu1 }
 0x1f3   : > { %v1191_v32 = vadd.f32 %v1190_v16, %v902_v28 }
 0x1f4   : > { %v904_v61 = vpop.f32.mrf.mxu0  ;;  %v2487_v35 = vpop.f32.mrf.mxu1 }
 0x1f5   : > { %1337 = vst [vmem:[%s2397_s26 + $0x120] sm:$0xff] %v1191_v32  ;;  %v905_v53 = vadd.f32 %v2389_v55, %v904_v61 }
 0x1f6   : > { %v906_v36 = vpop.f32.mrf.mxu0  ;;  %v1209_v39 = vpop.f32.mrf.mxu1 }
 0x1f7   : > { %v1194_v40 = vadd.f32 %v1193_v33, %v905_v53 }
 0x1f8   : > { %v909_v45 = vpop.f32.mrf.mxu0  ;;  %v2491_v43 = vpop.f32.mrf.mxu1 }
 0x1f9   : > { %1338 = vst [vmem:[%s2397_s26 + $0x128] sm:$0xff] %v1194_v40  ;;  %v910_v9 = vadd.f32 %v2389_v55, %v909_v45 }
 0x1fa   : > { %v911_v44 = vpop.f32.mrf.mxu0  ;;  %v2495_v24 = vpop.f32.mrf.mxu1 }
 0x1fb   : > { %v1199_v47 = vadd.f32 %v1622_v37, %v910_v9 }
 0x1fc   : > { %v912_v48 = vpop.f32.mrf.mxu0  ;;  %v2497_v51 = vpop.f32.mrf.mxu1 }
 0x1fd   : > { %1339 = vst [vmem:[%s2397_s26 + $0x130] sm:$0xff] %v1199_v47  ;;  %v913_v63 = vadd.f32 %v2389_v55, %v912_v48 }
 0x1fe   : > { %v914_v52 = vpop.f32.mrf.mxu0  ;;  %v2501_v56 = vpop.f32.mrf.mxu1 }
 0x1ff   : > { %v1202_v17 = vadd.f32 %v1623_v19, %v913_v63 }
 0x200   : > { %v917_v59 = vpop.f32.mrf.mxu0  ;;  %v1634_v60 = vpop.f32.mrf.mxu1 }
 0x201   : > { %1340 = vst [vmem:[%s2397_s26 + $0x138] sm:$0xff] %v1202_v17  ;;  %v918_v3 = vadd.f32 %v2389_v55, %v917_v59  ;;  %v1247_v1 = vadd.f32 %v1634_v60, %v958_v13 }
 0x202   : > { %v919_v4 = vpop.f32.mrf.mxu0  ;;  %v1238_v7 = vpop.f32.mrf.mxu1 }
 0x203   : > { %v1207_v8 = vadd.f32 %v1206_v31, %v918_v3  ;;  %1351 = vst [vmem:[%s2397_s26 + $0x190] sm:$0xff] %v1247_v1  ;;  %v1239_v2 = vadd.f32 %v1238_v7, %v950_v0 }
 0x204   : > { %v920_v11 = vpop.f32.mrf.mxu0  ;;  %v1635_v12 = vpop.f32.mrf.mxu1 }
 0x205   : > { %1341 = vst [vmem:[%s2397_s26 + $0x140] sm:$0xff] %v1207_v8  ;;  %1349 = vst [vmem:[%s2397_s26 + $0x180] sm:$0xff] %v1239_v2  ;;  %v921_v37 = vadd.f32 %v2389_v55, %v920_v11  ;;  %v1250_v21 = vadd.f32 %v1635_v12, %v961_v25 }
 0x206   : > { %v922_v15 = vpop.f32.mrf.mxu0  ;;  %v1241_v16 = vpop.f32.mrf.mxu1 }
 0x207   : > { %v1210_v57 = vadd.f32 %v1209_v39, %v921_v37  ;;  %1352 = vst [vmem:[%s2397_s26 + $0x198] sm:$0xff] %v1250_v21  ;;  %v1242_v29 = vadd.f32 %v1241_v16, %v953_v58  ;;  %v1001_v37 = vadd.f32 %v2389_v55, %v2378_v46 }
 0x208   : > { %v925_v19 = vpop.f32.mrf.mxu0  ;;  %v1638_v20 = vpop.f32.mrf.mxu1 }
 0x209   : > { %1342 = vst [vmem:[%s2397_s26 + $0x148] sm:$0xff] %v1210_v57  ;;  %1350 = vst [vmem:[%s2397_s26 + $0x188] sm:$0xff] %v1242_v29  ;;  %v926_v5 = vadd.f32 %v2389_v55, %v925_v19  ;;  %v1263_v33 = vadd.f32 %v1638_v20, %v974_v6 }
 0x20a   : > { %v927_v49 = vpop.f32.mrf.mxu0  ;;  %v1254_v23 = vpop.f32.mrf.mxu1 }
 0x20b   : > { %v1215_v28 = vadd.f32 %v2483_v27, %v926_v5  ;;  %1355 = vst [vmem:[%s2397_s26 + $0x1b0] sm:$0xff] %v1263_v33  ;;  %v1255_v41 = vadd.f32 %v1254_v23, %v966_v62 }
 0x20c   : > { %v928_v31 = vpop.f32.mrf.mxu0  ;;  %v1639_v32 = vpop.f32.mrf.mxu1 }
 0x20d   : > { %1343 = vst [vmem:[%s2397_s26 + $0x150] sm:$0xff] %v1215_v28  ;;  %1353 = vst [vmem:[%s2397_s26 + $0x1a0] sm:$0xff] %v1255_v41  ;;  %v929_v61 = vadd.f32 %v2389_v55, %v928_v31  ;;  %v1266_v53 = vadd.f32 %v1639_v32, %v977_v18 }
 0x20e   : > { %v930_v36 = vpop.f32.mrf.mxu0  ;;  %v1257_v39 = vpop.f32.mrf.mxu1 }
 0x20f   : > { %v1218_v27 = vadd.f32 %v2487_v35, %v929_v61  ;;  %1356 = vst [vmem:[%s2397_s26 + $0x1b8] sm:$0xff] %v1266_v53  ;;  %v1258_v40 = vadd.f32 %v1257_v39, %v969_v10 }
 0x210   : > { %v933_v45 = vpop.f32.mrf.mxu0  ;;  %v1642_v9 = vpop.f32.mrf.mxu1 }
 0x211   : > { %1344 = vst [vmem:[%s2397_s26 + $0x158] sm:$0xff] %v1218_v27  ;;  %1354 = vst [vmem:[%s2397_s26 + $0x1a8] sm:$0xff] %v1258_v40  ;;  %v934_v44 = vadd.f32 %v2389_v55, %v933_v45  ;;  %v1279_v47 = vadd.f32 %v1642_v9, %v990_v22 }
 0x212   : > { %v935_v48 = vpop.f32.mrf.mxu0  ;;  %v1270_v63 = vpop.f32.mrf.mxu1 }
 0x213   : > { %v1223_v35 = vadd.f32 %v2495_v24, %v934_v44  ;;  %1359 = vst [vmem:[%s2397_s26 + $0x1d0] sm:$0xff] %v1279_v47  ;;  %v1271_v52 = vadd.f32 %v1270_v63, %v982_v14 }
 0x214   : > { %v936_v13 = vpop.f32.mrf.mxu0  ;;  %v1643_v17 = vpop.f32.mrf.mxu1 }
 0x215   : > { %1345 = vst [vmem:[%s2397_s26 + $0x160] sm:$0xff] %v1223_v35  ;;  %1357 = vst [vmem:[%s2397_s26 + $0x1c0] sm:$0xff] %v1271_v52  ;;  %v937_v59 = vadd.f32 %v2389_v55, %v936_v13  ;;  %v1282_v60 = vadd.f32 %v1643_v17, %v993_v34 }
 0x216   : > { %v938_v0 = vpop.f32.mrf.mxu0  ;;  %v1273_v3 = vpop.f32.mrf.mxu1 }
 0x217   : > { %v1226_v24 = vadd.f32 %v2501_v56, %v937_v59  ;;  %1360 = vst [vmem:[%s2397_s26 + $0x1d8] sm:$0xff] %v1282_v60  ;;  %v1274_v1 = vadd.f32 %v1273_v3, %v985_v26 }
 0x218   : > { %v941_v4 = vpop.f32.mrf.mxu0  ;;  %v1646_v7 = vpop.f32.mrf.mxu1 }
 0x219   : > { %1346 = vst [vmem:[%s2397_s26 + $0x168] sm:$0xff] %v1226_v24  ;;  %1358 = vst [vmem:[%s2397_s26 + $0x1c8] sm:$0xff] %v1274_v1  ;;  %v942_v25 = vadd.f32 %v2389_v55, %v941_v4  ;;  %v1295_v8 = vadd.f32 %v1646_v7, %v1006_v38 }
 0x21a   : > { %v943_v2 = vpop.f32.mrf.mxu0  ;;  %v1286_v11 = vpop.f32.mrf.mxu1 }
 0x21b   : > { %v1231_v56 = vadd.f32 %v2491_v43, %v942_v25  ;;  %1363 = vst [vmem:[%s2397_s26 + $0x1f0] sm:$0xff] %v1295_v8  ;;  %v1287_v12 = vadd.f32 %v1286_v11, %v998_v30 }
 0x21c   : > { %v944_v58 = vpop.f32.mrf.mxu0  ;;  %v1647_v42 = vpop.f32.mrf.mxu1 }
 0x21d   : > { %1347 = vst [vmem:[%s2397_s26 + $0x170] sm:$0xff] %v1231_v56  ;;  %1361 = vst [vmem:[%s2397_s26 + $0x1e0] sm:$0xff] %v1287_v12  ;;  %v945_v21 = vadd.f32 %v2389_v55, %v944_v58  ;;  %v1298_v15 = vadd.f32 %v1647_v42, %v1009_v50  ;;  %1372 = sbr.rel (!%p2650_p6) target bundleno = 573 (0x23d), region = 48 }
 0x21e   : > { %v946_v16 = vpop.f32.mrf.mxu0  ;;  %v1289_v6 = vpop.f32.mrf.mxu1 }
 0x21f   : > { %v1234_v54 = vadd.f32 %v2497_v51, %v945_v21  ;;  %1364 = vst [vmem:[%s2397_s26 + $0x1f8] sm:$0xff] %v1298_v15  ;;  %v1290_v43 = vadd.f32 %v1289_v6, %v1001_v37 }
 0x221   : > { %1348 = vst [vmem:[%s2397_s26 + $0x178] sm:$0xff] %v1234_v54  ;;  %1362 = vst [vmem:[%s2397_s26 + $0x1e8] sm:$0xff] %v1290_v43 }
 0x222   : > { %s2660_s7 = smov (!%p1375_p5, %s1374_s7), 64 }
 0x223   : > { %s2578_s10 = sshll.u32 %s2660_s7, 7 }
 0x224   : > { %s1379_s27 = ssub.s32 8192, %s2578_s10 }
 0x225   : > { %1380 = vsyncadd %s1366_s29, %s1379_s27  ;;  %p1521_p0 = scmp.ne.s32.totalorder %s2578_s10, 0  ;;  %s1527_s24 = sshll.u32 %s1974_s16, 13 }
 0x226   : > { %s2588_s4 = scalar_lea.hbm %s2639_s3, %s1527_s24  ;;  %s1385_s6 = sshll.u32 %s2397_s26, 4  ;;  %s2591_s6 = int_to_ptr.vmem [resolvable:$true] %s1385_s6 }
 0x227   : > { %s1852_s22 = scalar_lea.vmem %s2591_s6, %s2578_s10  ;;  %s1930_s8 = smov [#allocation8]  }
 0x228   : > { %p1853_p3 = scmp.ne.s32.totalorder %s2591_s6, %s1852_s22  ;;  %s1856_s9 = sshll.u32 %s1930_s8, 4  ;;  %s1857_s9 = int_to_ptr.vmem [resolvable:$false] %s1856_s9 }
 0x229   : > { %s1858_s16 = scalar_lea.vmem %s1857_s9, 16384  ;;  %p1859_p12 = scmp.lt.s32.totalorder %s2591_s6, %s1857_s9 }
 0x22a   : > { %p1854_p7 = pnand %p1853_p3, %p1521_p0  ;;  %p1860_p8 = scmp.lt.s32.totalorder %s1858_s16, %s1852_s22 }
 0x22c   : > { %p1855_p9 = pneg %p1854_p7  ;;  %p1861_p4 = por %p1860_p8, %p1859_p12 }
 0x22e   : > { %p1862_p11 = pnand %p1861_p4, %p1855_p9 }
 0x230   : > { %1865 = shalt.err (!%p1862_p11)
}
 0x231   : > { %s1866_s17 = scalar_lea.hbm %s2588_s4, %s2578_s10  ;;  %s1870_s23 = scalar_lea.hbm %s2639_s3, 15232 }
 0x232   : > { %p1867_p2 = scmp.ne.s32.totalorder %s2588_s4, %s1866_s17  ;;  %p1871_p13 = scmp.lt.s32.totalorder %s2588_s4, %s2639_s3 }
 0x233   : > { %p1872_p6 = scmp.lt.s32.totalorder %s1870_s23, %s1866_s17 }
 0x234   : > { %p1868_p1 = pnand %p1867_p2, %p1521_p0 }
 0x235   : > { %p1873_p5 = por %p1872_p6, %p1871_p13 }
 0x236   : > { %p1869_p10 = pneg %p1868_p1 }
 0x238   : > { %p1874_p3 = pnand %p1873_p5, %p1869_p10 }
 0x23a   : > { %1877 = shalt.err (!%p1874_p3)
}
 0x23b   : > { %s1931_s7 = smov 128   ;;  %s1932_s27 = smov 8  }
 0x23c   : > { %1391 = dma.vmem_to_hbm [thread:$0]  (%p1521_p0), %s2591_s6, %s2578_s10, %s2588_s4, %s1366_s29, %s1931_s7, %s1931_s7, %s1932_s27  }
 0x23d PF: > { %s1400_s24 = sand.u32 1, %s1908_s12   ;;  %p2651_p7 = scmp.ne.s32.totalorder %s2645_s25, 0 }
 0x23e   : > { %p2652_p9 = scmp.ge.s32.totalorder %s1920_s15, 2  ;;  %s1401_s28 = scalar_lea.sflag [#allocation4], %s1400_s24 }
 0x240   : > { %p1701_p12 = pnand %p2652_p9, %p2651_p7 }
 0x242   : > { %p1702_p8 = pneg %p1701_p12 }
 0x244   : > { %1903 = dma.done.wait (%p1702_p8), %s1401_s28, 8192  }
 0x245   : > { %1905 = vsyncadd (%p1702_p8), %s1401_s28, 4294959104  ;;  %p17_p4 = scmp.ge.s32.totalorder %s1978_s18, 4   ;;  %s2653_s12 = smov %s1912_s13 }
 0x246   : > { %s2654_s13 = smov %s1916_s14  ;;  %s2655_s14 = smov %s1990_s21 }
 0x247   : > { %s2656_s15 = smov %s1978_s18  ;;  %19 = sbr.rel (!%p17_p4) target bundleno = 6 (0x6), region = 85 }
 0x24c   :  { %1406 = vsyncpa [#allocation3], 1 }
 0x24d   :  { %1408 = vsyncpa [#allocation3 + $0x1], 1 }
 0x24e   :  { %1409 = vsyncpa [#allocation6], 1 }
 0x24f   :  { %1410 = vsyncpa [#allocation4], 1 }
 0x250   :  { %1412 = vsyncpa [#allocation4 + $0x1], 1 }

</bundles_post_ra>
